<compile_context>
chip_gen: v5e
topology: v5e:2x2
jax: 0.10.0
libtpu: 0.0.40
codegen_flags: <defaults>
</compile_context>

<pallas_src>
import functools

import jax
import jax.numpy as jnp
from jax.experimental import pallas as pl
from jax.experimental.pallas import tpu as pltpu


# -----------------------------------------------------------------------------
# Kernel: whole DEG forward for one batch tile.
# -----------------------------------------------------------------------------
def _deg_kernel(
    alpha_ref,                      # SMEM (2, 3) PReLU alphas [branch, layer]
    x_rows_ref,                     # (bt*F, E)   token rows
    x_flat_ref,                     # (bt, 1, F*E) per-sample flattened view
    w1_ref, b1_ref,                 # (2, F*E, H), (2, 1, H)   [BN folded]
    w2_ref, b2_ref,                 # (2, H, H),   (2, 1, H)
    w3_ref, b3_ref,                 # (2, H, H),   (2, 1, H)
    wf_ref, bf_ref,                 # (2, H, E),   (2, 1, E)
    wqkv_ref, bqkv_ref,             # (2, E, 3A),  (2, 1, 3A)  [scale folded in Q]
    wp_ref, bp_ref,                 # (2, A, E),   (2, 1, E)
    o_dnn_ref, o_cn_ref,            # (bt*F, E) each
    *, seq, att, bt,
):
    F = seq
    A = att

    x_rows = x_rows_ref[...].astype(jnp.float32)                       # (bt*F, E)
    x_flat = x_flat_ref[...].reshape(bt, x_flat_ref.shape[-1])         # (bt, F*E)
    x_flat = x_flat.astype(jnp.float32)

    def prelu(h, m, l):
        a = alpha_ref[m, l]                                            # SMEM scalar
        return jnp.where(h >= 0.0, h, a * h)

    def mlp_branch(m):
        # Linear(no bias) + BatchNorm(eval) are pre-folded into (w, b) in the wrapper.
        h = jnp.dot(x_flat, w1_ref[m], preferred_element_type=jnp.float32) + b1_ref[m]
        h = prelu(h, m, 0)
        h = jnp.dot(h, w2_ref[m], preferred_element_type=jnp.float32) + b2_ref[m]
        h = prelu(h, m, 1)
        h = jnp.dot(h, w3_ref[m], preferred_element_type=jnp.float32) + b3_ref[m]
        h = prelu(h, m, 2)
        # TODO(synk): Dropout(p=0.5) after each PReLU is an inference-mode identity here.
        return jnp.dot(h, wf_ref[m], preferred_element_type=jnp.float32) + bf_ref[m]  # (bt, E)

    def attention_branch(m):
        # Fused Q/K/V projection for all bt*F token rows: one MXU push.
        qkv = jnp.dot(x_rows, wqkv_ref[m], preferred_element_type=jnp.float32)
        qkv = qkv + bqkv_ref[m]                                        # (bt*F, 3A)
        ctx_rows = []
        for b in range(bt):                                            # static unroll
            rows = qkv[b * F:(b + 1) * F, :]                           # (F, 3A)
            q = rows[:, :A]
            k = rows[:, A:2 * A]
            v = rows[:, 2 * A:]
            # 1/sqrt(embed_dim) already folded into Wq/bq.
            s = jnp.dot(q, k.T, preferred_element_type=jnp.float32)    # (F, F)
            s = s - jnp.max(s, axis=-1, keepdims=True)
            p = jnp.exp(s)
            ctx = jnp.dot(p, v, preferred_element_type=jnp.float32)    # (F, A)
            # Normalize after the PV matmul: (F, A) multiply instead of (F, F).
            ctx = ctx * pl.reciprocal(jnp.sum(p, axis=-1, keepdims=True), approx=True)
            ctx_rows.append(ctx)
        ctx_all = ctx_rows[0] if bt == 1 else jnp.concatenate(ctx_rows, axis=0)
        # Output projection over all rows at once.
        return jnp.dot(ctx_all, wp_ref[m], preferred_element_type=jnp.float32) + bp_ref[m]

    for m, o_ref in ((0, o_dnn_ref), (1, o_cn_ref)):
        emb = mlp_branch(m)                                            # (bt, E)
        att_out = attention_branch(m)                                  # (bt*F, E)
        for b in range(bt):
            x_b = x_rows[b * F:(b + 1) * F, :]                         # (F, E)
            a_b = att_out[b * F:(b + 1) * F, :]                        # (F, E)
            gate = jax.nn.sigmoid(emb[b:b + 1, :] * a_b)               # (F, E)
            o_ref[b * F:(b + 1) * F, :] = (gate * x_b).astype(o_ref.dtype)


# -----------------------------------------------------------------------------
# One-time parameter preparation (transposes / folds / fusions) — per review.
# -----------------------------------------------------------------------------
def prepare_deg_params(params, *, emb_dim, eps=1e-5):
    def fold_mlp(p):
        ws, bs = [], []
        for l in range(3):
            s = p[f"bn{l}_gamma"] / jnp.sqrt(p[f"bn{l}_var"] + eps)
            ws.append(p[f"w{l}"].T * s[None, :])                       # (in, H)
            bs.append((p[f"bn{l}_beta"] - p[f"bn{l}_mean"] * s)[None, :])
        return ws, bs

    wd, bd = fold_mlp(params["mlp_dnn"])
    wc, bc = fold_mlp(params["mlp_cross"])
    stack = lambda a, b: jnp.stack([a, b], axis=0)

    scale = float(emb_dim) ** 0.5

    def fuse_att(p):
        wqkv = jnp.concatenate([p["wq"].T / scale, p["wk"].T, p["wv"].T], axis=1)  # (E, 3A)
        bqkv = jnp.concatenate([p["bq"] / scale, p["bk"], p["bv"]])[None, :]       # (1, 3A)
        return wqkv, bqkv

    wqkv_d, bqkv_d = fuse_att(params["att_dnn"])
    wqkv_c, bqkv_c = fuse_att(params["att_cn"])

    return {
        "alphas": jnp.array(
            [[params["mlp_dnn"][f"a{l}"] for l in range(3)],
             [params["mlp_cross"][f"a{l}"] for l in range(3)]], dtype=jnp.float32),
        "w1": stack(wd[0], wc[0]), "b1": stack(bd[0], bc[0]),
        "w2": stack(wd[1], wc[1]), "b2": stack(bd[1], bc[1]),
        "w3": stack(wd[2], wc[2]), "b3": stack(bd[2], bc[2]),
        "wf": stack(params["mlp_dnn"]["wf"].T, params["mlp_cross"]["wf"].T),
        "bf": stack(params["mlp_dnn"]["bf"][None, :], params["mlp_cross"]["bf"][None, :]),
        "wqkv": stack(wqkv_d, wqkv_c), "bqkv": stack(bqkv_d, bqkv_c),
        "wp": stack(params["att_dnn"]["wp"].T, params["att_cn"]["wp"].T),
        "bp": stack(params["att_dnn"]["bp"][None, :], params["att_cn"]["bp"][None, :]),
    }


# -----------------------------------------------------------------------------
# Wrapper.
# -----------------------------------------------------------------------------
def deg_forward(x, pp):
    B, Fld, E = x.shape
    FE = Fld * E
    A = pp["wp"].shape[1]

    # >=2 parallel grid blocks (v7x megacore) when legal; each block is a batch tile.
    bt = B
    if B % 2 == 0 and ((B // 2) * Fld) % 8 == 0:
        bt = B // 2
    grid = (B // bt,)

    x_rows = x.reshape(B * Fld, E)       # token rows (free bitcast on HBM)
    x_flat3 = x.reshape(B, 1, FE)        # per-sample flattened view

    kernel = functools.partial(_deg_kernel, seq=Fld, att=A, bt=bt)

    def wfull(arr):
        return pl.BlockSpec(arr.shape, lambda i: (0, 0, 0))

    in_specs = [
        pl.BlockSpec(memory_space=pltpu.MemorySpace.SMEM),             # PReLU alphas
        pl.BlockSpec((bt * Fld, E), lambda i: (i, 0)),                 # x rows
        pl.BlockSpec((bt, 1, FE), lambda i: (i, 0, 0)),                # x flattened
        wfull(pp["w1"]), wfull(pp["b1"]),
        wfull(pp["w2"]), wfull(pp["b2"]),
        wfull(pp["w3"]), wfull(pp["b3"]),
        wfull(pp["wf"]), wfull(pp["bf"]),
        wfull(pp["wqkv"]), wfull(pp["bqkv"]),
        wfull(pp["wp"]), wfull(pp["bp"]),
    ]
    out_specs = (
        pl.BlockSpec((bt * Fld, E), lambda i: (i, 0)),
        pl.BlockSpec((bt * Fld, E), lambda i: (i, 0)),
    )

    dnn_rows, cn_rows = pl.pallas_call(
        kernel,
        out_shape=(jax.ShapeDtypeStruct((B * Fld, E), x.dtype),
                   jax.ShapeDtypeStruct((B * Fld, E), x.dtype)),
        grid_spec=pltpu.PrefetchScalarGridSpec(
            num_scalar_prefetch=0,
            grid=grid,
            in_specs=in_specs,
            out_specs=out_specs,
        ),
        compiler_params=pltpu.CompilerParams(
            dimension_semantics=("parallel",)),
    )(pp["alphas"], x_rows, x_flat3,
      pp["w1"], pp["b1"], pp["w2"], pp["b2"], pp["w3"], pp["b3"],
      pp["wf"], pp["bf"], pp["wqkv"], pp["bqkv"], pp["wp"], pp["bp"])

    return dnn_rows.reshape(B, Fld, E), cn_rows.reshape(B, Fld, E)


# -----------------------------------------------------------------------------
# Plain-JAX reference mirroring the PyTorch DEG forward (eval mode).
# -----------------------------------------------------------------------------
def _reference_deg(x, params, *, emb_dim, eps=1e-5):
    B, Fld, E = x.shape
    x_flat = x.reshape(B, Fld * E)
    scale = float(emb_dim) ** 0.5

    def mlp(p):
        h = x_flat
        for l in range(3):
            h = h @ p[f"w{l}"].T
            h = (h - p[f"bn{l}_mean"]) * (p[f"bn{l}_gamma"] / jnp.sqrt(p[f"bn{l}_var"] + eps))
            h = h + p[f"bn{l}_beta"]
            h = jnp.where(h >= 0, h, p[f"a{l}"] * h)
            # Dropout(p=0.5): identity in eval mode.
        return (h @ p["wf"].T + p["bf"])[:, None, :]

    def attn(p):
        q = x @ p["wq"].T + p["bq"]
        k = x @ p["wk"].T + p["bk"]
        v = x @ p["wv"].T + p["bv"]
        a = jax.nn.softmax(jnp.einsum("bfa,bga->bfg", q, k) / scale, axis=-1)
        return jnp.einsum("bfg,bga->bfa", a, v) @ p["wp"].T + p["bp"]

    dnn_emb, cross_emb = mlp(params["mlp_dnn"]), mlp(params["mlp_cross"])
    dnn_att, cn_att = attn(params["att_dnn"]), attn(params["att_cn"])
    dnn_out = jax.nn.sigmoid(dnn_emb * dnn_att) * x
    cn_out = jax.nn.sigmoid(cross_emb * cn_att) * x
    return dnn_out, cn_out


if __name__ == "__main__":
    B, FIELD, E, A, H = 2, 8, 32, 16, 256   # batch, field_num, emb_dim, att_size, mlp_layer
    key = jax.random.PRNGKey(0)
    keys = iter(jax.random.split(key, 64))

    def xavier(out_dim, in_dim):
        bound = (6.0 / (in_dim + out_dim)) ** 0.5
        return jax.random.uniform(next(keys), (out_dim, in_dim), jnp.float32, -bound, bound)

    def linear(out_dim, in_dim):
        bound = 1.0 / (in_dim ** 0.5)
        w = jax.random.uniform(next(keys), (out_dim, in_dim), jnp.float32, -bound, bound)
        b = jax.random.uniform(next(keys), (out_dim,), jnp.float32, -bound, bound)
        return w, b

    def make_mlp_branch(in_dim, hidden, out_dim, alpha_base):
        p, d = {}, in_dim
        for l in range(3):
            p[f"w{l}"] = xavier(hidden, d)
            p[f"bn{l}_gamma"] = jax.random.uniform(next(keys), (hidden,), jnp.float32, 0.8, 1.2)
            p[f"bn{l}_beta"] = 0.1 * jax.random.normal(next(keys), (hidden,), jnp.float32)
            p[f"bn{l}_mean"] = 0.1 * jax.random.normal(next(keys), (hidden,), jnp.float32)
            p[f"bn{l}_var"] = jax.random.uniform(next(keys), (hidden,), jnp.float32, 0.8, 1.2)
            p[f"a{l}"] = jnp.float32(0.25 + alpha_base + 0.05 * l)     # distinct PReLU alphas
            d = hidden
        p["wf"], p["bf"] = linear(out_dim, hidden)
        return p

    def make_attention(emb_dim, att_size):
        p = {}
        p["wq"], p["bq"] = linear(att_size, emb_dim)
        p["wk"], p["bk"] = linear(att_size, emb_dim)
        p["wv"], p["bv"] = linear(att_size, emb_dim)
        p["wp"], p["bp"] = linear(emb_dim, att_size)
        return p

    params = {
        "mlp_dnn": make_mlp_branch(FIELD * E, H, E, 0.00),
        "mlp_cross": make_mlp_branch(FIELD * E, H, E, 0.10),
        "att_dnn": make_attention(E, A),
        "att_cn": make_attention(E, A),
    }
    x = jax.random.normal(next(keys), (B, FIELD, E), dtype=jnp.float32)

    # One-time param prep (transpose / BN+scale folding / QKV fusion / stacking).
    pp = prepare_deg_params(params, emb_dim=E)

    fwd = jax.jit(deg_forward)
    dnn_out, cn_out = fwd(x, pp)
    jax.block_until_ready((dnn_out, cn_out))

    ref_dnn, ref_cn = _reference_deg(x, params, emb_dim=E)
    assert dnn_out.shape == (B, FIELD, E) and cn_out.shape == (B, FIELD, E)
    assert jnp.allclose(dnn_out, ref_dnn, atol=1e-3, rtol=1e-3), "dnn_out mismatch vs reference"
    assert jnp.allclose(cn_out, ref_cn, atol=1e-3, rtol=1e-3), "cn_out mismatch vs reference"

    print("KERNEL_OK")
</pallas_src>

<mosaic_0001>
module attributes {stable_mosaic.version = 11 : i64} {
  func.func @_deg_kernel(%arg0: i32, %arg1: memref<2x3xf32, #tpu.memory_space<smem>>, %arg2: memref<8x32xf32, #tpu.memory_space<vmem>>, %arg3: memref<1x1x256xf32, #tpu.memory_space<vmem>>, %arg4: memref<2x256x256xf32, #tpu.memory_space<vmem>>, %arg5: memref<2x1x256xf32, #tpu.memory_space<vmem>>, %arg6: memref<2x256x256xf32, #tpu.memory_space<vmem>>, %arg7: memref<2x1x256xf32, #tpu.memory_space<vmem>>, %arg8: memref<2x256x256xf32, #tpu.memory_space<vmem>>, %arg9: memref<2x1x256xf32, #tpu.memory_space<vmem>>, %arg10: memref<2x256x32xf32, #tpu.memory_space<vmem>>, %arg11: memref<2x1x32xf32, #tpu.memory_space<vmem>>, %arg12: memref<2x32x48xf32, #tpu.memory_space<vmem>>, %arg13: memref<2x1x48xf32, #tpu.memory_space<vmem>>, %arg14: memref<2x16x32xf32, #tpu.memory_space<vmem>>, %arg15: memref<2x1x32xf32, #tpu.memory_space<vmem>>, %arg16: memref<8x32xf32, #tpu.memory_space<vmem>>, %arg17: memref<8x32xf32, #tpu.memory_space<vmem>>) attributes {dimension_semantics = [#tpu.dimension_semantics<parallel>], iteration_bounds = array<i64: 2>, scalar_prefetch = 0 : i64, scratch_operands = 0 : i64, tpu.core_type = #tpu.core_type<tc>, window_params = [{transform_indices = @transform_0, window_bounds = array<i64: 2, 3>}, {transform_indices = @transform_1, window_bounds = array<i64: 8, 32>}, {transform_indices = @transform_2, window_bounds = array<i64: 1, 1, 256>}, {pipeline_mode = #tpu.pipeline_mode<synchronous>, transform_indices = @transform_3, window_bounds = array<i64: 2, 256, 256>}, {pipeline_mode = #tpu.pipeline_mode<synchronous>, transform_indices = @transform_4, window_bounds = array<i64: 2, 1, 256>}, {pipeline_mode = #tpu.pipeline_mode<synchronous>, transform_indices = @transform_5, window_bounds = array<i64: 2, 256, 256>}, {pipeline_mode = #tpu.pipeline_mode<synchronous>, transform_indices = @transform_6, window_bounds = array<i64: 2, 1, 256>}, {pipeline_mode = #tpu.pipeline_mode<synchronous>, transform_indices = @transform_7, window_bounds = array<i64: 2, 256, 256>}, {pipeline_mode = #tpu.pipeline_mode<synchronous>, transform_indices = @transform_8, window_bounds = array<i64: 2, 1, 256>}, {pipeline_mode = #tpu.pipeline_mode<synchronous>, transform_indices = @transform_9, window_bounds = array<i64: 2, 256, 32>}, {pipeline_mode = #tpu.pipeline_mode<synchronous>, transform_indices = @transform_10, window_bounds = array<i64: 2, 1, 32>}, {pipeline_mode = #tpu.pipeline_mode<synchronous>, transform_indices = @transform_11, window_bounds = array<i64: 2, 32, 48>}, {pipeline_mode = #tpu.pipeline_mode<synchronous>, transform_indices = @transform_12, window_bounds = array<i64: 2, 1, 48>}, {pipeline_mode = #tpu.pipeline_mode<synchronous>, transform_indices = @transform_13, window_bounds = array<i64: 2, 16, 32>}, {pipeline_mode = #tpu.pipeline_mode<synchronous>, transform_indices = @transform_14, window_bounds = array<i64: 2, 1, 32>}, {transform_indices = @transform_15, window_bounds = array<i64: 8, 32>}, {transform_indices = @transform_16, window_bounds = array<i64: 8, 32>}]} {
    %c0 = arith.constant 0 : index
    %c0_0 = arith.constant 0 : index
    %0 = vector.load %arg2[%c0, %c0_0] : memref<8x32xf32, #tpu.memory_space<vmem>>, vector<8x32xf32>
    %c0_1 = arith.constant 0 : index
    %c0_2 = arith.constant 0 : index
    %c0_3 = arith.constant 0 : index
    %1 = vector.load %arg3[%c0_1, %c0_2, %c0_3] : memref<1x1x256xf32, #tpu.memory_space<vmem>>, vector<1x1x256xf32>
    %2 = vector.shape_cast %1 : vector<1x1x256xf32> to vector<1x256xf32>
    %c0_4 = arith.constant 0 : index
    %c0_5 = arith.constant 0 : index
    %c0_6 = arith.constant 0 : index
    %3 = vector.load %arg4[%c0_4, %c0_5, %c0_6] : memref<2x256x256xf32, #tpu.memory_space<vmem>>, vector<1x256x256xf32>
    %4 = vector.shape_cast %3 : vector<1x256x256xf32> to vector<256x256xf32>
    %cst = arith.constant dense<0.000000e+00> : vector<1x256xf32>
    %5 = tpu.matmul %2, %4, %cst {dimension_numbers = #tpu.dot_dimension_numbers<[1], [0], [0], [1], [0, 0, 1, 1], [], []>} : vector<1x256xf32>, vector<256x256xf32>, vector<1x256xf32> -> vector<1x256xf32>
    %c0_7 = arith.constant 0 : index
    %c0_8 = arith.constant 0 : index
    %c0_9 = arith.constant 0 : index
    %6 = vector.load %arg5[%c0_7, %c0_8, %c0_9] : memref<2x1x256xf32, #tpu.memory_space<vmem>>, vector<1x1x256xf32>
    %7 = vector.shape_cast %6 : vector<1x1x256xf32> to vector<1x256xf32>
    %8 = arith.addf %5, %7 : vector<1x256xf32>
    %c0_10 = arith.constant 0 : index
    %c0_11 = arith.constant 0 : index
    %9 = memref.load %arg1[%c0_10, %c0_11] : memref<2x3xf32, #tpu.memory_space<smem>>
    %cst_12 = arith.constant 0.000000e+00 : f32
    %10 = vector.broadcast %cst_12 : f32 to vector<1x256xf32>
    %11 = arith.cmpf oge, %8, %10 : vector<1x256xf32>
    %12 = vector.broadcast %9 : f32 to vector<1x256xf32>
    %13 = arith.mulf %12, %8 : vector<1x256xf32>
    %14 = arith.select %11, %8, %13 : vector<1x256xi1>, vector<1x256xf32>
    %c0_13 = arith.constant 0 : index
    %c0_14 = arith.constant 0 : index
    %c0_15 = arith.constant 0 : index
    %15 = vector.load %arg6[%c0_13, %c0_14, %c0_15] : memref<2x256x256xf32, #tpu.memory_space<vmem>>, vector<1x256x256xf32>
    %16 = vector.shape_cast %15 : vector<1x256x256xf32> to vector<256x256xf32>
    %cst_16 = arith.constant dense<0.000000e+00> : vector<1x256xf32>
    %17 = tpu.matmul %14, %16, %cst_16 {dimension_numbers = #tpu.dot_dimension_numbers<[1], [0], [0], [1], [0, 0, 1, 1], [], []>} : vector<1x256xf32>, vector<256x256xf32>, vector<1x256xf32> -> vector<1x256xf32>
    %c0_17 = arith.constant 0 : index
    %c0_18 = arith.constant 0 : index
    %c0_19 = arith.constant 0 : index
    %18 = vector.load %arg7[%c0_17, %c0_18, %c0_19] : memref<2x1x256xf32, #tpu.memory_space<vmem>>, vector<1x1x256xf32>
    %19 = vector.shape_cast %18 : vector<1x1x256xf32> to vector<1x256xf32>
    %20 = arith.addf %17, %19 : vector<1x256xf32>
    %c0_20 = arith.constant 0 : index
    %c1 = arith.constant 1 : index
    %21 = memref.load %arg1[%c0_20, %c1] : memref<2x3xf32, #tpu.memory_space<smem>>
    %cst_21 = arith.constant 0.000000e+00 : f32
    %22 = vector.broadcast %cst_21 : f32 to vector<1x256xf32>
    %23 = arith.cmpf oge, %20, %22 : vector<1x256xf32>
    %24 = vector.broadcast %21 : f32 to vector<1x256xf32>
    %25 = arith.mulf %24, %20 : vector<1x256xf32>
    %26 = arith.select %23, %20, %25 : vector<1x256xi1>, vector<1x256xf32>
    %c0_22 = arith.constant 0 : index
    %c0_23 = arith.constant 0 : index
    %c0_24 = arith.constant 0 : index
    %27 = vector.load %arg8[%c0_22, %c0_23, %c0_24] : memref<2x256x256xf32, #tpu.memory_space<vmem>>, vector<1x256x256xf32>
    %28 = vector.shape_cast %27 : vector<1x256x256xf32> to vector<256x256xf32>
    %cst_25 = arith.constant dense<0.000000e+00> : vector<1x256xf32>
    %29 = tpu.matmul %26, %28, %cst_25 {dimension_numbers = #tpu.dot_dimension_numbers<[1], [0], [0], [1], [0, 0, 1, 1], [], []>} : vector<1x256xf32>, vector<256x256xf32>, vector<1x256xf32> -> vector<1x256xf32>
    %c0_26 = arith.constant 0 : index
    %c0_27 = arith.constant 0 : index
    %c0_28 = arith.constant 0 : index
    %30 = vector.load %arg9[%c0_26, %c0_27, %c0_28] : memref<2x1x256xf32, #tpu.memory_space<vmem>>, vector<1x1x256xf32>
    %31 = vector.shape_cast %30 : vector<1x1x256xf32> to vector<1x256xf32>
    %32 = arith.addf %29, %31 : vector<1x256xf32>
    %c0_29 = arith.constant 0 : index
    %c2 = arith.constant 2 : index
    %33 = memref.load %arg1[%c0_29, %c2] : memref<2x3xf32, #tpu.memory_space<smem>>
    %cst_30 = arith.constant 0.000000e+00 : f32
    %34 = vector.broadcast %cst_30 : f32 to vector<1x256xf32>
    %35 = arith.cmpf oge, %32, %34 : vector<1x256xf32>
    %36 = vector.broadcast %33 : f32 to vector<1x256xf32>
    %37 = arith.mulf %36, %32 : vector<1x256xf32>
    %38 = arith.select %35, %32, %37 : vector<1x256xi1>, vector<1x256xf32>
    %c0_31 = arith.constant 0 : index
    %c0_32 = arith.constant 0 : index
    %c0_33 = arith.constant 0 : index
    %39 = vector.load %arg10[%c0_31, %c0_32, %c0_33] : memref<2x256x32xf32, #tpu.memory_space<vmem>>, vector<1x256x32xf32>
    %40 = vector.shape_cast %39 : vector<1x256x32xf32> to vector<256x32xf32>
    %cst_34 = arith.constant dense<0.000000e+00> : vector<1x32xf32>
    %41 = tpu.matmul %38, %40, %cst_34 {dimension_numbers = #tpu.dot_dimension_numbers<[1], [0], [0], [1], [0, 0, 1, 1], [], []>} : vector<1x256xf32>, vector<256x32xf32>, vector<1x32xf32> -> vector<1x32xf32>
    %c0_35 = arith.constant 0 : index
    %c0_36 = arith.constant 0 : index
    %c0_37 = arith.constant 0 : index
    %42 = vector.load %arg11[%c0_35, %c0_36, %c0_37] : memref<2x1x32xf32, #tpu.memory_space<vmem>>, vector<1x1x32xf32>
    %43 = vector.shape_cast %42 : vector<1x1x32xf32> to vector<1x32xf32>
    %44 = arith.addf %41, %43 : vector<1x32xf32>
    %c0_38 = arith.constant 0 : index
    %c0_39 = arith.constant 0 : index
    %c0_40 = arith.constant 0 : index
    %45 = vector.load %arg12[%c0_38, %c0_39, %c0_40] : memref<2x32x48xf32, #tpu.memory_space<vmem>>, vector<1x32x48xf32>
    %46 = vector.shape_cast %45 : vector<1x32x48xf32> to vector<32x48xf32>
    %cst_41 = arith.constant dense<0.000000e+00> : vector<8x48xf32>
    %47 = tpu.matmul %0, %46, %cst_41 {dimension_numbers = #tpu.dot_dimension_numbers<[1], [0], [0], [1], [0, 0, 1, 1], [], []>} : vector<8x32xf32>, vector<32x48xf32>, vector<8x48xf32> -> vector<8x48xf32>
    %c0_42 = arith.constant 0 : index
    %c0_43 = arith.constant 0 : index
    %c0_44 = arith.constant 0 : index
    %48 = vector.load %arg13[%c0_42, %c0_43, %c0_44] : memref<2x1x48xf32, #tpu.memory_space<vmem>>, vector<1x1x48xf32>
    %49 = vector.shape_cast %48 : vector<1x1x48xf32> to vector<1x48xf32>
    %50 = vector.broadcast %49 : vector<1x48xf32> to vector<8x48xf32>
    %51 = arith.addf %47, %50 : vector<8x48xf32>
    %52 = vector.extract_strided_slice %51 {offsets = [0, 0], sizes = [8, 16], strides = [1, 1]} : vector<8x48xf32> to vector<8x16xf32>
    %53 = vector.extract_strided_slice %51 {offsets = [0, 16], sizes = [8, 16], strides = [1, 1]} : vector<8x48xf32> to vector<8x16xf32>
    %54 = vector.extract_strided_slice %51 {offsets = [0, 32], sizes = [8, 16], strides = [1, 1]} : vector<8x48xf32> to vector<8x16xf32>
    %55 = tpu.transpose %53, [1, 0] : vector<8x16xf32> -> vector<16x8xf32>
    %cst_45 = arith.constant dense<0.000000e+00> : vector<8x8xf32>
    %56 = tpu.matmul %52, %55, %cst_45 {dimension_numbers = #tpu.dot_dimension_numbers<[1], [0], [0], [1], [0, 0, 1, 1], [], []>} : vector<8x16xf32>, vector<16x8xf32>, vector<8x8xf32> -> vector<8x8xf32>
    %cst_46 = arith.constant dense<0xFF800000> : vector<8xf32>
    %57 = vector.multi_reduction <maximumf>, %56, %cst_46 [1] : vector<8x8xf32> to vector<8xf32>
    %58 = vector.shape_cast %57 : vector<8xf32> to vector<8x1xf32>
    %59 = vector.broadcast %58 : vector<8x1xf32> to vector<8x8xf32>
    %60 = arith.subf %56, %59 : vector<8x8xf32>
    %61 = math.exp %60 : vector<8x8xf32>
    %cst_47 = arith.constant dense<0.000000e+00> : vector<8x16xf32>
    %62 = tpu.matmul %61, %54, %cst_47 {dimension_numbers = #tpu.dot_dimension_numbers<[1], [0], [0], [1], [0, 0, 1, 1], [], []>} : vector<8x8xf32>, vector<8x16xf32>, vector<8x16xf32> -> vector<8x16xf32>
    %cst_48 = arith.constant dense<0.000000e+00> : vector<8xf32>
    %63 = vector.multi_reduction <add>, %61, %cst_48 [1] : vector<8x8xf32> to vector<8xf32>
    %64 = vector.shape_cast %63 : vector<8xf32> to vector<8x1xf32>
    %65 = tpu.reciprocal %64 {approx = true} : vector<8x1xf32> -> vector<8x1xf32>
    %66 = vector.broadcast %65 : vector<8x1xf32> to vector<8x16xf32>
    %67 = arith.mulf %62, %66 : vector<8x16xf32>
    %c0_49 = arith.constant 0 : index
    %c0_50 = arith.constant 0 : index
    %c0_51 = arith.constant 0 : index
    %68 = vector.load %arg14[%c0_49, %c0_50, %c0_51] : memref<2x16x32xf32, #tpu.memory_space<vmem>>, vector<1x16x32xf32>
    %69 = vector.shape_cast %68 : vector<1x16x32xf32> to vector<16x32xf32>
    %cst_52 = arith.constant dense<0.000000e+00> : vector<8x32xf32>
    %70 = tpu.matmul %67, %69, %cst_52 {dimension_numbers = #tpu.dot_dimension_numbers<[1], [0], [0], [1], [0, 0, 1, 1], [], []>} : vector<8x16xf32>, vector<16x32xf32>, vector<8x32xf32> -> vector<8x32xf32>
    %c0_53 = arith.constant 0 : index
    %c0_54 = arith.constant 0 : index
    %c0_55 = arith.constant 0 : index
    %71 = vector.load %arg15[%c0_53, %c0_54, %c0_55] : memref<2x1x32xf32, #tpu.memory_space<vmem>>, vector<1x1x32xf32>
    %72 = vector.shape_cast %71 : vector<1x1x32xf32> to vector<1x32xf32>
    %73 = vector.broadcast %72 : vector<1x32xf32> to vector<8x32xf32>
    %74 = arith.addf %70, %73 : vector<8x32xf32>
    %75 = vector.broadcast %44 : vector<1x32xf32> to vector<8x32xf32>
    %76 = arith.mulf %75, %74 : vector<8x32xf32>
    %77 = arith.negf %76 : vector<8x32xf32>
    %78 = math.exp %77 : vector<8x32xf32>
    %cst_56 = arith.constant 1.000000e+00 : f32
    %79 = vector.broadcast %cst_56 : f32 to vector<8x32xf32>
    %80 = arith.addf %79, %78 : vector<8x32xf32>
    %81 = arith.divf %79, %80 : vector<8x32xf32>
    %82 = arith.mulf %81, %0 : vector<8x32xf32>
    %c0_57 = arith.constant 0 : index
    %c0_58 = arith.constant 0 : index
    %83 = vector.load %arg16[%c0_57, %c0_58] : memref<8x32xf32, #tpu.memory_space<vmem>>, vector<8x32xf32>
    tpu.vector_store %arg16[%c0_57, %c0_58], %82 {strides = array<i32>} : memref<8x32xf32, #tpu.memory_space<vmem>>, vector<8x32xf32>,
    %c1_59 = arith.constant 1 : index
    %c0_60 = arith.constant 0 : index
    %c0_61 = arith.constant 0 : index
    %84 = vector.load %arg4[%c1_59, %c0_60, %c0_61] : memref<2x256x256xf32, #tpu.memory_space<vmem>>, vector<1x256x256xf32>
    %85 = vector.shape_cast %84 : vector<1x256x256xf32> to vector<256x256xf32>
    %cst_62 = arith.constant dense<0.000000e+00> : vector<1x256xf32>
    %86 = tpu.matmul %2, %85, %cst_62 {dimension_numbers = #tpu.dot_dimension_numbers<[1], [0], [0], [1], [0, 0, 1, 1], [], []>} : vector<1x256xf32>, vector<256x256xf32>, vector<1x256xf32> -> vector<1x256xf32>
    %c1_63 = arith.constant 1 : index
    %c0_64 = arith.constant 0 : index
    %c0_65 = arith.constant 0 : index
    %87 = vector.load %arg5[%c1_63, %c0_64, %c0_65] : memref<2x1x256xf32, #tpu.memory_space<vmem>>, vector<1x1x256xf32>
    %88 = vector.shape_cast %87 : vector<1x1x256xf32> to vector<1x256xf32>
    %89 = arith.addf %86, %88 : vector<1x256xf32>
    %c1_66 = arith.constant 1 : index
    %c0_67 = arith.constant 0 : index
    %90 = memref.load %arg1[%c1_66, %c0_67] : memref<2x3xf32, #tpu.memory_space<smem>>
    %cst_68 = arith.constant 0.000000e+00 : f32
    %91 = vector.broadcast %cst_68 : f32 to vector<1x256xf32>
    %92 = arith.cmpf oge, %89, %91 : vector<1x256xf32>
    %93 = vector.broadcast %90 : f32 to vector<1x256xf32>
    %94 = arith.mulf %93, %89 : vector<1x256xf32>
    %95 = arith.select %92, %89, %94 : vector<1x256xi1>, vector<1x256xf32>
    %c1_69 = arith.constant 1 : index
    %c0_70 = arith.constant 0 : index
    %c0_71 = arith.constant 0 : index
    %96 = vector.load %arg6[%c1_69, %c0_70, %c0_71] : memref<2x256x256xf32, #tpu.memory_space<vmem>>, vector<1x256x256xf32>
    %97 = vector.shape_cast %96 : vector<1x256x256xf32> to vector<256x256xf32>
    %cst_72 = arith.constant dense<0.000000e+00> : vector<1x256xf32>
    %98 = tpu.matmul %95, %97, %cst_72 {dimension_numbers = #tpu.dot_dimension_numbers<[1], [0], [0], [1], [0, 0, 1, 1], [], []>} : vector<1x256xf32>, vector<256x256xf32>, vector<1x256xf32> -> vector<1x256xf32>
    %c1_73 = arith.constant 1 : index
    %c0_74 = arith.constant 0 : index
    %c0_75 = arith.constant 0 : index
    %99 = vector.load %arg7[%c1_73, %c0_74, %c0_75] : memref<2x1x256xf32, #tpu.memory_space<vmem>>, vector<1x1x256xf32>
    %100 = vector.shape_cast %99 : vector<1x1x256xf32> to vector<1x256xf32>
    %101 = arith.addf %98, %100 : vector<1x256xf32>
    %c1_76 = arith.constant 1 : index
    %c1_77 = arith.constant 1 : index
    %102 = memref.load %arg1[%c1_76, %c1_77] : memref<2x3xf32, #tpu.memory_space<smem>>
    %cst_78 = arith.constant 0.000000e+00 : f32
    %103 = vector.broadcast %cst_78 : f32 to vector<1x256xf32>
    %104 = arith.cmpf oge, %101, %103 : vector<1x256xf32>
    %105 = vector.broadcast %102 : f32 to vector<1x256xf32>
    %106 = arith.mulf %105, %101 : vector<1x256xf32>
    %107 = arith.select %104, %101, %106 : vector<1x256xi1>, vector<1x256xf32>
    %c1_79 = arith.constant 1 : index
    %c0_80 = arith.constant 0 : index
    %c0_81 = arith.constant 0 : index
    %108 = vector.load %arg8[%c1_79, %c0_80, %c0_81] : memref<2x256x256xf32, #tpu.memory_space<vmem>>, vector<1x256x256xf32>
    %109 = vector.shape_cast %108 : vector<1x256x256xf32> to vector<256x256xf32>
    %cst_82 = arith.constant dense<0.000000e+00> : vector<1x256xf32>
    %110 = tpu.matmul %107, %109, %cst_82 {dimension_numbers = #tpu.dot_dimension_numbers<[1], [0], [0], [1], [0, 0, 1, 1], [], []>} : vector<1x256xf32>, vector<256x256xf32>, vector<1x256xf32> -> vector<1x256xf32>
    %c1_83 = arith.constant 1 : index
    %c0_84 = arith.constant 0 : index
    %c0_85 = arith.constant 0 : index
    %111 = vector.load %arg9[%c1_83, %c0_84, %c0_85] : memref<2x1x256xf32, #tpu.memory_space<vmem>>, vector<1x1x256xf32>
    %112 = vector.shape_cast %111 : vector<1x1x256xf32> to vector<1x256xf32>
    %113 = arith.addf %110, %112 : vector<1x256xf32>
    %c1_86 = arith.constant 1 : index
    %c2_87 = arith.constant 2 : index
    %114 = memref.load %arg1[%c1_86, %c2_87] : memref<2x3xf32, #tpu.memory_space<smem>>
    %cst_88 = arith.constant 0.000000e+00 : f32
    %115 = vector.broadcast %cst_88 : f32 to vector<1x256xf32>
    %116 = arith.cmpf oge, %113, %115 : vector<1x256xf32>
    %117 = vector.broadcast %114 : f32 to vector<1x256xf32>
    %118 = arith.mulf %117, %113 : vector<1x256xf32>
    %119 = arith.select %116, %113, %118 : vector<1x256xi1>, vector<1x256xf32>
    %c1_89 = arith.constant 1 : index
    %c0_90 = arith.constant 0 : index
    %c0_91 = arith.constant 0 : index
    %120 = vector.load %arg10[%c1_89, %c0_90, %c0_91] : memref<2x256x32xf32, #tpu.memory_space<vmem>>, vector<1x256x32xf32>
    %121 = vector.shape_cast %120 : vector<1x256x32xf32> to vector<256x32xf32>
    %cst_92 = arith.constant dense<0.000000e+00> : vector<1x32xf32>
    %122 = tpu.matmul %119, %121, %cst_92 {dimension_numbers = #tpu.dot_dimension_numbers<[1], [0], [0], [1], [0, 0, 1, 1], [], []>} : vector<1x256xf32>, vector<256x32xf32>, vector<1x32xf32> -> vector<1x32xf32>
    %c1_93 = arith.constant 1 : index
    %c0_94 = arith.constant 0 : index
    %c0_95 = arith.constant 0 : index
    %123 = vector.load %arg11[%c1_93, %c0_94, %c0_95] : memref<2x1x32xf32, #tpu.memory_space<vmem>>, vector<1x1x32xf32>
    %124 = vector.shape_cast %123 : vector<1x1x32xf32> to vector<1x32xf32>
    %125 = arith.addf %122, %124 : vector<1x32xf32>
    %c1_96 = arith.constant 1 : index
    %c0_97 = arith.constant 0 : index
    %c0_98 = arith.constant 0 : index
    %126 = vector.load %arg12[%c1_96, %c0_97, %c0_98] : memref<2x32x48xf32, #tpu.memory_space<vmem>>, vector<1x32x48xf32>
    %127 = vector.shape_cast %126 : vector<1x32x48xf32> to vector<32x48xf32>
    %cst_99 = arith.constant dense<0.000000e+00> : vector<8x48xf32>
    %128 = tpu.matmul %0, %127, %cst_99 {dimension_numbers = #tpu.dot_dimension_numbers<[1], [0], [0], [1], [0, 0, 1, 1], [], []>} : vector<8x32xf32>, vector<32x48xf32>, vector<8x48xf32> -> vector<8x48xf32>
    %c1_100 = arith.constant 1 : index
    %c0_101 = arith.constant 0 : index
    %c0_102 = arith.constant 0 : index
    %129 = vector.load %arg13[%c1_100, %c0_101, %c0_102] : memref<2x1x48xf32, #tpu.memory_space<vmem>>, vector<1x1x48xf32>
    %130 = vector.shape_cast %129 : vector<1x1x48xf32> to vector<1x48xf32>
    %131 = vector.broadcast %130 : vector<1x48xf32> to vector<8x48xf32>
    %132 = arith.addf %128, %131 : vector<8x48xf32>
    %133 = vector.extract_strided_slice %132 {offsets = [0, 0], sizes = [8, 16], strides = [1, 1]} : vector<8x48xf32> to vector<8x16xf32>
    %134 = vector.extract_strided_slice %132 {offsets = [0, 16], sizes = [8, 16], strides = [1, 1]} : vector<8x48xf32> to vector<8x16xf32>
    %135 = vector.extract_strided_slice %132 {offsets = [0, 32], sizes = [8, 16], strides = [1, 1]} : vector<8x48xf32> to vector<8x16xf32>
    %136 = tpu.transpose %134, [1, 0] : vector<8x16xf32> -> vector<16x8xf32>
    %cst_103 = arith.constant dense<0.000000e+00> : vector<8x8xf32>
    %137 = tpu.matmul %133, %136, %cst_103 {dimension_numbers = #tpu.dot_dimension_numbers<[1], [0], [0], [1], [0, 0, 1, 1], [], []>} : vector<8x16xf32>, vector<16x8xf32>, vector<8x8xf32> -> vector<8x8xf32>
    %cst_104 = arith.constant dense<0xFF800000> : vector<8xf32>
    %138 = vector.multi_reduction <maximumf>, %137, %cst_104 [1] : vector<8x8xf32> to vector<8xf32>
    %139 = vector.shape_cast %138 : vector<8xf32> to vector<8x1xf32>
    %140 = vector.broadcast %139 : vector<8x1xf32> to vector<8x8xf32>
    %141 = arith.subf %137, %140 : vector<8x8xf32>
    %142 = math.exp %141 : vector<8x8xf32>
    %cst_105 = arith.constant dense<0.000000e+00> : vector<8x16xf32>
    %143 = tpu.matmul %142, %135, %cst_105 {dimension_numbers = #tpu.dot_dimension_numbers<[1], [0], [0], [1], [0, 0, 1, 1], [], []>} : vector<8x8xf32>, vector<8x16xf32>, vector<8x16xf32> -> vector<8x16xf32>
    %cst_106 = arith.constant dense<0.000000e+00> : vector<8xf32>
    %144 = vector.multi_reduction <add>, %142, %cst_106 [1] : vector<8x8xf32> to vector<8xf32>
    %145 = vector.shape_cast %144 : vector<8xf32> to vector<8x1xf32>
    %146 = tpu.reciprocal %145 {approx = true} : vector<8x1xf32> -> vector<8x1xf32>
    %147 = vector.broadcast %146 : vector<8x1xf32> to vector<8x16xf32>
    %148 = arith.mulf %143, %147 : vector<8x16xf32>
    %c1_107 = arith.constant 1 : index
    %c0_108 = arith.constant 0 : index
    %c0_109 = arith.constant 0 : index
    %149 = vector.load %arg14[%c1_107, %c0_108, %c0_109] : memref<2x16x32xf32, #tpu.memory_space<vmem>>, vector<1x16x32xf32>
    %150 = vector.shape_cast %149 : vector<1x16x32xf32> to vector<16x32xf32>
    %cst_110 = arith.constant dense<0.000000e+00> : vector<8x32xf32>
    %151 = tpu.matmul %148, %150, %cst_110 {dimension_numbers = #tpu.dot_dimension_numbers<[1], [0], [0], [1], [0, 0, 1, 1], [], []>} : vector<8x16xf32>, vector<16x32xf32>, vector<8x32xf32> -> vector<8x32xf32>
    %c1_111 = arith.constant 1 : index
    %c0_112 = arith.constant 0 : index
    %c0_113 = arith.constant 0 : index
    %152 = vector.load %arg15[%c1_111, %c0_112, %c0_113] : memref<2x1x32xf32, #tpu.memory_space<vmem>>, vector<1x1x32xf32>
    %153 = vector.shape_cast %152 : vector<1x1x32xf32> to vector<1x32xf32>
    %154 = vector.broadcast %153 : vector<1x32xf32> to vector<8x32xf32>
    %155 = arith.addf %151, %154 : vector<8x32xf32>
    %156 = vector.broadcast %125 : vector<1x32xf32> to vector<8x32xf32>
    %157 = arith.mulf %156, %155 : vector<8x32xf32>
    %158 = arith.negf %157 : vector<8x32xf32>
    %159 = math.exp %158 : vector<8x32xf32>
    %cst_114 = arith.constant 1.000000e+00 : f32
    %160 = vector.broadcast %cst_114 : f32 to vector<8x32xf32>
    %161 = arith.addf %160, %159 : vector<8x32xf32>
    %162 = arith.divf %160, %161 : vector<8x32xf32>
    %163 = arith.mulf %162, %0 : vector<8x32xf32>
    %c0_115 = arith.constant 0 : index
    %c0_116 = arith.constant 0 : index
    %164 = vector.load %arg17[%c0_115, %c0_116] : memref<8x32xf32, #tpu.memory_space<vmem>>, vector<8x32xf32>
    tpu.vector_store %arg17[%c0_115, %c0_116], %163 {strides = array<i32>} : memref<8x32xf32, #tpu.memory_space<vmem>>, vector<8x32xf32>,
    return
  }
  func.func @transform_0(%arg0: i32) -> (i32, i32) {
    %c0_i32 = arith.constant 0 : i32
    %c0_i32_0 = arith.constant 0 : i32
    %c0_i32_1 = arith.constant 0 : i32
    return %c0_i32, %c0_i32_0 : i32, i32
  }
  func.func @transform_1(%arg0: i32) -> (i32, i32) {
    %c0_i32 = arith.constant 0 : i32
    %c0_i32_0 = arith.constant 0 : i32
    return %arg0, %c0_i32 : i32, i32
  }
  func.func @transform_2(%arg0: i32) -> (i32, i32, i32) {
    %c0_i32 = arith.constant 0 : i32
    %c0_i32_0 = arith.constant 0 : i32
    %c0_i32_1 = arith.constant 0 : i32
    return %arg0, %c0_i32, %c0_i32_0 : i32, i32, i32
  }
  func.func @transform_3(%arg0: i32) -> (i32, i32, i32) {
    %c0_i32 = arith.constant 0 : i32
    %c0_i32_0 = arith.constant 0 : i32
    %c0_i32_1 = arith.constant 0 : i32
    %c0_i32_2 = arith.constant 0 : i32
    return %c0_i32, %c0_i32_0, %c0_i32_1 : i32, i32, i32
  }
  func.func @transform_4(%arg0: i32) -> (i32, i32, i32) {
    %c0_i32 = arith.constant 0 : i32
    %c0_i32_0 = arith.constant 0 : i32
    %c0_i32_1 = arith.constant 0 : i32
    %c0_i32_2 = arith.constant 0 : i32
    return %c0_i32, %c0_i32_0, %c0_i32_1 : i32, i32, i32
  }
  func.func @transform_5(%arg0: i32) -> (i32, i32, i32) {
    %c0_i32 = arith.constant 0 : i32
    %c0_i32_0 = arith.constant 0 : i32
    %c0_i32_1 = arith.constant 0 : i32
    %c0_i32_2 = arith.constant 0 : i32
    return %c0_i32, %c0_i32_0, %c0_i32_1 : i32, i32, i32
  }
  func.func @transform_6(%arg0: i32) -> (i32, i32, i32) {
    %c0_i32 = arith.constant 0 : i32
    %c0_i32_0 = arith.constant 0 : i32
    %c0_i32_1 = arith.constant 0 : i32
    %c0_i32_2 = arith.constant 0 : i32
    return %c0_i32, %c0_i32_0, %c0_i32_1 : i32, i32, i32
  }
  func.func @transform_7(%arg0: i32) -> (i32, i32, i32) {
    %c0_i32 = arith.constant 0 : i32
    %c0_i32_0 = arith.constant 0 : i32
    %c0_i32_1 = arith.constant 0 : i32
    %c0_i32_2 = arith.constant 0 : i32
    return %c0_i32, %c0_i32_0, %c0_i32_1 : i32, i32, i32
  }
  func.func @transform_8(%arg0: i32) -> (i32, i32, i32) {
    %c0_i32 = arith.constant 0 : i32
    %c0_i32_0 = arith.constant 0 : i32
    %c0_i32_1 = arith.constant 0 : i32
    %c0_i32_2 = arith.constant 0 : i32
    return %c0_i32, %c0_i32_0, %c0_i32_1 : i32, i32, i32
  }
  func.func @transform_9(%arg0: i32) -> (i32, i32, i32) {
    %c0_i32 = arith.constant 0 : i32
    %c0_i32_0 = arith.constant 0 : i32
    %c0_i32_1 = arith.constant 0 : i32
    %c0_i32_2 = arith.constant 0 : i32
    return %c0_i32, %c0_i32_0, %c0_i32_1 : i32, i32, i32
  }
  func.func @transform_10(%arg0: i32) -> (i32, i32, i32) {
    %c0_i32 = arith.constant 0 : i32
    %c0_i32_0 = arith.constant 0 : i32
    %c0_i32_1 = arith.constant 0 : i32
    %c0_i32_2 = arith.constant 0 : i32
    return %c0_i32, %c0_i32_0, %c0_i32_1 : i32, i32, i32
  }
  func.func @transform_11(%arg0: i32) -> (i32, i32, i32) {
    %c0_i32 = arith.constant 0 : i32
    %c0_i32_0 = arith.constant 0 : i32
    %c0_i32_1 = arith.constant 0 : i32
    %c0_i32_2 = arith.constant 0 : i32
    return %c0_i32, %c0_i32_0, %c0_i32_1 : i32, i32, i32
  }
  func.func @transform_12(%arg0: i32) -> (i32, i32, i32) {
    %c0_i32 = arith.constant 0 : i32
    %c0_i32_0 = arith.constant 0 : i32
    %c0_i32_1 = arith.constant 0 : i32
    %c0_i32_2 = arith.constant 0 : i32
    return %c0_i32, %c0_i32_0, %c0_i32_1 : i32, i32, i32
  }
  func.func @transform_13(%arg0: i32) -> (i32, i32, i32) {
    %c0_i32 = arith.constant 0 : i32
    %c0_i32_0 = arith.constant 0 : i32
    %c0_i32_1 = arith.constant 0 : i32
    %c0_i32_2 = arith.constant 0 : i32
    return %c0_i32, %c0_i32_0, %c0_i32_1 : i32, i32, i32
  }
  func.func @transform_14(%arg0: i32) -> (i32, i32, i32) {
    %c0_i32 = arith.constant 0 : i32
    %c0_i32_0 = arith.constant 0 : i32
    %c0_i32_1 = arith.constant 0 : i32
    %c0_i32_2 = arith.constant 0 : i32
    return %c0_i32, %c0_i32_0, %c0_i32_1 : i32, i32, i32
  }
  func.func @transform_15(%arg0: i32) -> (i32, i32) {
    %c0_i32 = arith.constant 0 : i32
    %c0_i32_0 = arith.constant 0 : i32
    return %arg0, %c0_i32 : i32, i32
  }
  func.func @transform_16(%arg0: i32) -> (i32, i32) {
    %c0_i32 = arith.constant 0 : i32
    %c0_i32_0 = arith.constant 0 : i32
    return %arg0, %c0_i32 : i32, i32
  }
}

</mosaic_0001>

<bundles_post_ra>
// kernel: deg_forward.1
= control target key start
LH: loop header
LB: loop body
LE: loop exit
PB: predicated region body
PF: predicated region fallthrough
CT: control target
= control target key end

     0   :  { %s3202_s0 = inlined_call_operand.vmem [shape: f32[2,3], index: 0, kind: input, shape index: {}]   ;;  %s3203_s1 = inlined_call_operand.vmem [shape: f32[16,32], index: 1, kind: input, shape index: {}]   ;;  %s3204_s2 = inlined_call_operand.vmem [shape: f32[2,1,256], index: 2, kind: input, shape index: {}]   ;;  %s3205_s3 = inlined_call_operand.hbm [shape: f32[2,256,256], index: 3, kind: input, shape index: {}]   ;;  %s3206_s4 = inlined_call_operand.vmem [shape: f32[2,1,256], index: 4, kind: input, shape index: {}]   ;;  %s3207_s5 = inlined_call_operand.hbm [shape: f32[2,256,256], index: 5, kind: input, shape index: {}]   ;;  %s3208_s6 = inlined_call_operand.vmem [shape: f32[2,1,256], index: 6, kind: input, shape index: {}]   ;;  %s3209_s7 = inlined_call_operand.hbm [shape: f32[2,256,256], index: 7, kind: input, shape index: {}]   ;;  %s3210_s8 = inlined_call_operand.vmem [shape: f32[2,1,256], index: 8, kind: input, shape index: {}]   ;;  %s3211_s9 = inlined_call_operand.vmem [shape: f32[2,256,32], index: 9, kind: input, shape index: {}]   ;;  %s3212_s10 = inlined_call_operand.vmem [shape: f32[2,1,32], index: 10, kind: input, shape index: {}]   ;;  %s3213_s11 = inlined_call_operand.vmem [shape: f32[2,32,48], index: 11, kind: input, shape index: {}]   ;;  %s3214_s12 = inlined_call_operand.vmem [shape: f32[2,1,48], index: 12, kind: input, shape index: {}]   ;;  %s3215_s13 = inlined_call_operand.vmem [shape: f32[2,16,32], index: 13, kind: input, shape index: {}]   ;;  %s3216_s14 = inlined_call_operand.vmem [shape: f32[2,1,32], index: 14, kind: input, shape index: {}]   ;;  %s3217_s15 = inlined_call_operand.hbm [shape: f32[16,32], index: 15, kind: output, shape index: {0}]   ;;  %s3218_s16 = inlined_call_operand.hbm [shape: f32[16,32], index: 16, kind: output, shape index: {1}]  }
   0x1   :  { %3231 = sst [smem:[#allocation26_spill]] %s3202_s0 }
   0x2   :  { %3232 = sst [smem:[#allocation27_spill]] %s3203_s1 }
   0x3   :  { %3233 = sst [smem:[#allocation28_spill]] %s3204_s2 }
   0x4   :  { %3234 = sst [smem:[#allocation29_spill]] %s3207_s5 }
   0x5   :  { %3235 = sst [smem:[#allocation30_spill]] %s3217_s15 }
   0x6   :  { %3236 = sst [smem:[#allocation31_spill]] %s3218_s16 }
   0x7   :  { %22 = vsyncpa [#allocation5], 0 }
   0x8   :  { %23 = vsyncpa [#allocation3], 0 }
   0x9   :  { %24 = vsyncpa [#allocation8], 0 }
   0xa   :  { %25 = vsyncpa [#allocation4], 0 }
   0xb   :  { %27 = vsyncpa [#allocation4 + $0x1], 0 }
   0xc   :  { %28 = vsyncpa [#allocation12], 0 }
   0xd   :  { %30 = vsyncpa [#allocation12 + $0x1], 0  ;;  %s2697_s21 = smov 0   ;;  %s2699_s22 = smov 0  }
   0xe   :  { %s2701_s23 = smov 0   ;;  %s2703_s24 = smov 0  }
   0xf LB: > { %3237 = sst [smem:[#allocation18_spill]] %s2590_s21  ;;  %s2718_s25 = sadd.s32 4294967295, %s2602_s24   ;;  %s2602_s24 = sphi %s2703_s24, %s3262_s24   ;;  %s2598_s23 = sphi %s2701_s23, %s3265_s23   ;;  %s2594_s22 = sphi %s2699_s22, %s3264_s22   ;;  %s2590_s21 = sphi %s2697_s21, %s3263_s21  }
  0x10   : > { %3238 = sst [smem:[#allocation19_spill]] %s2594_s22  ;;  %s2198_s26 = sadd.s32 4294967294, %s2602_s24  }
  0x11   : > { %3239 = sst [smem:[#allocation20_spill]] %s2598_s23  ;;  %s2722_s27 = sadd.s32 1, %s2602_s24  }
  0x12   : > { %3240 = sst [smem:[#allocation21_spill]] %s2602_s24  ;;  %s368_s28 = sadd.s32 1, %s2598_s23 }
  0x13   : > { %3241 = sst [smem:[#allocation22_spill]] %s2722_s27  ;;  %s365_s29 = ssub.s32 %s2602_s24, %s2722_s27 }
  0x14   : > { %p378_p0 = scmp.ne.s32.totalorder %s2598_s23, %s2594_s22  ;;  %p366_p1 = scmp.eq.s32.totalorder %s365_s29, 0 }
  0x15   : > { %p379_p2 = scmp.eq.s32.totalorder %s2718_s25, 1  ;;  %p384_p3 = scmp.ne.s32.totalorder %s2594_s22, %s2590_s21 }
  0x16   : > { %p385_p4 = scmp.eq.s32.totalorder %s2198_s26, 1  ;;  %p2199_p7 = scmp.ge.s32.totalorder %s2602_s24, 1 }
  0x17   : > { %s2733_s30 = scalar_select %p366_p1, %s2598_s23, %s368_s28  }
  0x18   : > { %p2735_p5 = por %p379_p2, %p378_p0  ;;  %p2739_p6 = por %p385_p4, %p384_p3 }
  0x19   : > { %3242 = sst [smem:[#allocation23_spill]] %s2733_s30  ;;  %p418_p8 = scmp.lt.s32.totalorder %s2602_s24, 3 }
  0x1a   : > { %s3243_s0 = scalar_select %p2735_p5, 1, 0 }
  0x1b   : > { %s3245_s17 = scalar_select %p2739_p6, 1, 0 }
  0x1c   : > { %3244 = sst [smem:[#allocation24_spill]] %s3243_s0  ;;  %p2321_p9 = scmp.eq.s32.totalorder %s2718_s25, 0 }
  0x1d   : > { %3246 = sst [smem:[#allocation25_spill]] %s3245_s17  ;;  %p2746_p10 = pnand %p2199_p7, %p418_p8 }
  0x1e   : > { %s3248_s5 = sld [smem:[#allocation29_spill]]  ;;  %s2604_s17 = smov [#allocation7]  }
  0x1f   : > { %p2301_p11 = pneg %p2746_p10  ;;  %s3249_s30 = sld [smem:[#allocation26_spill]] }
  0x20   : > { %s458_s21 = sshll.u32 %s2604_s17, 4  ;;  %s2605_s19 = smov 256   ;;  %s459_s21 = int_to_ptr.vmem [resolvable:$true] %s458_s21 }
  0x21   : > { %p2760_p12 = pnand %p2321_p9, %p2301_p11  ;;  %s2606_s20 = smov 16  }
  0x22   : > { %s439_s29 = sshll.u32 %s3205_s3, 4  ;;  %s2608_s24 = smov [#allocation6]   ;;  %s440_s29 = int_to_ptr.hbm [resolvable:$true] %s439_s29 }
  0x23   : > { %s441_s16 = sshll.u32 %s2608_s24, 4  ;;  %s473_s0 = sshll.u32 %s3209_s7, 4  ;;  %s442_s16 = int_to_ptr.vmem [resolvable:$true] %s441_s16  ;;  %s474_s0 = int_to_ptr.hbm [resolvable:$true] %s473_s0 }
  0x24   : > { %s456_s26 = sshll.u32 %s3248_s5, 4  ;;  %s2607_s5 = smov [#allocation2]   ;;  %s457_s26 = int_to_ptr.hbm [resolvable:$true] %s456_s26 }
  0x25   : > { %s430_s23 = sshll.u32 %s3249_s30, 4  ;;  %s2609_s22 = smov [#allocation9]   ;;  %s431_s23 = int_to_ptr.vmem [resolvable:$true] %s430_s23 }
  0x26   : > { %2310 = dma.hbm_to_vmem [thread:$0]  (!%p2760_p12), %s457_s26, 16384, %s459_s21, [#allocation8], %s2605_s19, %s2605_s19, %s2606_s20  }
  0x27   : > { %2304 = dma.vmem_to_smem (!%p2760_p12), %s431_s23, 32, %s2607_s5, [#allocation5]  }
  0x28   : > { %2307 = dma.hbm_to_vmem [thread:$0]  (!%p2760_p12), %s440_s29, 16384, %s442_s16, [#allocation3], %s2605_s19, %s2605_s19, %s2606_s20  }
  0x29   : > { %s475_s21 = sshll.u32 %s2609_s22, 4  ;;  %526 = sbr.rel (%p2746_p10) target bundleno = 2068 (0x814), region = 80  ;;  %s476_s21 = int_to_ptr.vmem [resolvable:$true] %s475_s21 }
  0x2a   : > { %2313 = dma.hbm_to_vmem [thread:$0]  (!%p2760_p12), %s474_s0, 16384, %s476_s21, [#allocation8], %s2605_s19, %s2605_s19, %s2606_s20  }
  0x2e   : > { %2569 = dma.done.wait (%p2321_p9), [#allocation5], 32  }
  0x2f   : > { %2571 = vsyncadd (%p2321_p9), [#allocation5], 4294967264 }
  0x30   : > { %2573 = dma.done.wait (%p2321_p9), [#allocation3], 16384  }
  0x31   : > { %2575 = vsyncadd (%p2321_p9), [#allocation3], 4294950912 }
  0x32   : > { %2577 = dma.done.wait (%p2321_p9), [#allocation8], 32768  }
  0x33   : > { %2579 = vsyncadd (%p2321_p9), [#allocation8], 4294934528 }
  0x34   : > { %548 = sfence }
  0x35   : > { %v642_v0 = vld [vmem:[#allocation6 + $0xf8] sm:$0xff]  ;;  %v641_v1 = vld [vmem:[#allocation6 + $0xf0] sm:$0xff]  ;;  %v640_v2 = vld [vmem:[#allocation6 + $0xe8] sm:$0xff]  ;;  %p601_p13 = scmp.lt.s32.totalorder %s2718_s25, 1  ;;  %s3251_s2 = sld [smem:[#allocation28_spill]]  ;;  %vm1171_vm4 = vcmask 261120  }
  0x36   : > { %726 = vmatpush.msra.mxu2 %v642_v0  ;;  %686 = vmatpush.msra.mxu0 %v641_v1  ;;  %v674_v3 = vld [vmem:[#allocation6 + $0x1f8] sm:$0xff]  ;;  %v639_v4 = vld [vmem:[#allocation6 + $0xe0] sm:$0xff]  ;;  %v673_v5 = vld [vmem:[#allocation6 + $0x1f0] sm:$0xff]  ;;  %s2813_s0 = sld [smem:[#allocation2]]  ;;  %s2610_s20 = smov 96   ;;  %vm1198_vm7 = vcmask 130048  }
  0x37   : > { %746 = vmatpush.msra.mxu3 %v674_v3  ;;  %706 = vmatpush.msra.mxu1 %v673_v5  ;;  %v638_v6 = vld [vmem:[#allocation6 + $0xd8] sm:$0xff]  ;;  %v672_v7 = vld [vmem:[#allocation6 + $0x1e8] sm:$0xff]  ;;  %v637_v8 = vld [vmem:[#allocation6 + $0xd0] sm:$0xff]  ;;  %s2796_s5 = scalar_select %p601_p13, %s2718_s25, 1  ;;  %vm1223_vm8 = vcmask 64512  }
  0x38   : > { %727 = vmatpush.msra.mxu2 %v640_v2  ;;  %687 = vmatpush.msra.mxu0 %v639_v4  ;;  %v671_v9 = vld [vmem:[#allocation6 + $0x1e0] sm:$0xff]  ;;  %v670_v10 = vld [vmem:[#allocation6 + $0x1d8] sm:$0xff]  ;;  %v636_v11 = vld [vmem:[#allocation6 + $0xc8] sm:$0xff]  ;;  %s2867_s19 = sld [smem:[#allocation2 + $0x1]]  ;;  %s2611_s30 = smov 112  }
  0x39   : > { %747 = vmatpush.msra.mxu3 %v672_v7  ;;  %707 = vmatpush.msra.mxu1 %v671_v9  ;;  %v635_v12 = vld [vmem:[#allocation6 + $0xc0] sm:$0xff]  ;;  %v669_v13 = vld [vmem:[#allocation6 + $0x1d0] sm:$0xff]  ;;  %v668_v14 = vld [vmem:[#allocation6 + $0x1c8] sm:$0xff]  ;;  %s2213_s15 = sshll.u32 %s2796_s5, 1  ;;  %s2212_s24 = sshll.u32 %s2796_s5, 3 }
  0x3a   : > { %728 = vmatpush.msra.mxu2 %v638_v6  ;;  %688 = vmatpush.msra.mxu0 %v637_v8  ;;  %v667_v15 = vld [vmem:[#allocation6 + $0x1c0] sm:$0xff]  ;;  %v634_v16 = vld [vmem:[#allocation6 + $0xb8] sm:$0xff]  ;;  %v633_v17 = vld [vmem:[#allocation6 + $0xb0] sm:$0xff]  ;;  %s3252_s1 = sld [smem:[#allocation27_spill]]  ;;  %s2277_s16 = sshll.u32 %s2718_s25, 3 }
  0x3b   : > { %748 = vmatpush.msra.mxu3 %v670_v10  ;;  %708 = vmatpush.msra.mxu1 %v669_v13  ;;  %v666_v18 = vld [vmem:[#allocation6 + $0x1b8] sm:$0xff]  ;;  %v665_v19 = vld [vmem:[#allocation6 + $0x1b0] sm:$0xff]  ;;  %v632_v20 = vld [vmem:[#allocation6 + $0xa8] sm:$0xff]  ;;  %s608_s23 = scalar_lea.vmem %s3251_s2, %s2213_s15  ;;  %s2215_s5 = sld [smem:[#allocation2 + $0x2]] }
  0x3c   : > { %729 = vmatpush.msra.mxu2 %v636_v11  ;;  %689 = vmatpush.msra.mxu0 %v635_v12  ;;  %v631_v21 = vld [vmem:[#allocation6 + $0xa0] sm:$0xff]  ;;  %v664_v22 = vld [vmem:[#allocation6 + $0x1a8] sm:$0xff]  ;;  %v630_v24 = vld [vmem:[#allocation6 + $0x98] sm:$0xff]  ;;  %s2969_s15 = sld [smem:[#allocation2 + $0x80]] }
  0x3d   : > { %749 = vmatpush.msra.mxu3 %v668_v14  ;;  %709 = vmatpush.msra.mxu1 %v667_v15  ;;  %v663_v23 = vld [vmem:[#allocation6 + $0x1a0] sm:$0xff]  ;;  %v629_v25 = vld [vmem:[#allocation6 + $0x90] sm:$0xff]  ;;  %v662_v26 = vld [vmem:[#allocation6 + $0x198] sm:$0xff]  ;;  %s3035_s29 = sld [smem:[#allocation2 + $0x81]] }
  0x3e   : > { %730 = vmatpush.msra.mxu2 %v634_v16  ;;  %690 = vmatpush.msra.mxu0 %v633_v17  ;;  %v661_v27 = vld [vmem:[#allocation6 + $0x190] sm:$0xff]  ;;  %v628_v28 = vld [vmem:[#allocation6 + $0x88] sm:$0xff]  ;;  %v627_v29 = vld [vmem:[#allocation6 + $0x80] sm:$0xff] }
  0x3f   : > { %750 = vmatpush.msra.mxu3 %v666_v18  ;;  %710 = vmatpush.msra.mxu1 %v665_v19  ;;  %v660_v30 = vld [vmem:[#allocation6 + $0x188] sm:$0xff]  ;;  %v659_v31 = vld [vmem:[#allocation6 + $0x180] sm:$0xff]  ;;  %v626_v32 = vld [vmem:[#allocation6 + $0x78] sm:$0xff] }
  0x40   : > { %731 = vmatpush.msra.mxu2 %v632_v20  ;;  %691 = vmatpush.msra.mxu0 %v631_v21  ;;  %v625_v33 = vld [vmem:[#allocation6 + $0x70] sm:$0xff]  ;;  %v658_v34 = vld [vmem:[#allocation6 + $0x178] sm:$0xff]  ;;  %v624_v36 = vld [vmem:[#allocation6 + $0x68] sm:$0xff]  ;;  %s2889_s18 = scalar_lea.vmem %s3252_s1, %s2212_s24 }
  0x41   : > { %751 = vmatpush.msra.mxu3 %v664_v22  ;;  %711 = vmatpush.msra.mxu1 %v663_v23  ;;  %v657_v35 = vld [vmem:[#allocation6 + $0x170] sm:$0xff]  ;;  %v623_v37 = vld [vmem:[#allocation6 + $0x60] sm:$0xff]  ;;  %v656_v38 = vld [vmem:[#allocation6 + $0x168] sm:$0xff] }
  0x42   : > { %732 = vmatpush.msra.mxu2 %v630_v24  ;;  %692 = vmatpush.msra.mxu0 %v629_v25  ;;  %v655_v39 = vld [vmem:[#allocation6 + $0x160] sm:$0xff]  ;;  %v622_v40 = vld [vmem:[#allocation6 + $0x58] sm:$0xff]  ;;  %v621_v41 = vld [vmem:[#allocation6 + $0x50] sm:$0xff] }
  0x43   : > { %752 = vmatpush.msra.mxu3 %v662_v26  ;;  %712 = vmatpush.msra.mxu1 %v661_v27  ;;  %v654_v42 = vld [vmem:[#allocation6 + $0x158] sm:$0xff]  ;;  %v653_v43 = vld [vmem:[#allocation6 + $0x150] sm:$0xff]  ;;  %v620_v44 = vld [vmem:[#allocation6 + $0x48] sm:$0xff] }
  0x44   : > { %733 = vmatpush.msra.mxu2 %v628_v28  ;;  %693 = vmatpush.msra.mxu0 %v627_v29  ;;  %v619_v45 = vld [vmem:[#allocation6 + $0x40] sm:$0xff]  ;;  %v652_v46 = vld [vmem:[#allocation6 + $0x148] sm:$0xff]  ;;  %v618_v48 = vld [vmem:[#allocation6 + $0x38] sm:$0xff] }
  0x45   : > { %753 = vmatpush.msra.mxu3 %v660_v30  ;;  %713 = vmatpush.msra.mxu1 %v659_v31  ;;  %v651_v47 = vld [vmem:[#allocation6 + $0x140] sm:$0xff]  ;;  %v617_v49 = vld [vmem:[#allocation6 + $0x30] sm:$0xff]  ;;  %v650_v50 = vld [vmem:[#allocation6 + $0x138] sm:$0xff] }
  0x46   : > { %734 = vmatpush.msra.mxu2 %v626_v32  ;;  %694 = vmatpush.msra.mxu0 %v625_v33  ;;  %v649_v51 = vld [vmem:[#allocation6 + $0x130] sm:$0xff]  ;;  %v616_v52 = vld [vmem:[#allocation6 + $0x28] sm:$0xff]  ;;  %v615_v53 = vld [vmem:[#allocation6 + $0x20] sm:$0xff] }
  0x47   : > { %754 = vmatpush.msra.mxu3 %v658_v34  ;;  %714 = vmatpush.msra.mxu1 %v657_v35  ;;  %v648_v54 = vld [vmem:[#allocation6 + $0x128] sm:$0xff]  ;;  %v647_v55 = vld [vmem:[#allocation6 + $0x120] sm:$0xff]  ;;  %v614_v57 = vld [vmem:[#allocation6 + $0x18] sm:$0xff] }
  0x48   : > { %735 = vmatpush.msra.mxu2 %v624_v36  ;;  %695 = vmatpush.msra.mxu0 %v623_v37  ;;  %v610_v56 = vld [vmem:[%s608_s23] sm:$0x3]  ;;  %v613_v58 = vld [vmem:[#allocation6 + $0x10] sm:$0xff]  ;;  %v646_v59 = vld [vmem:[#allocation6 + $0x118] sm:$0xff]  ;;  %s3255_s23 = sld [smem:[#allocation30_spill]] }
  0x49   : > { %755 = vmatpush.msra.mxu3 %v656_v38  ;;  %715 = vmatpush.msra.mxu1 %v655_v39  ;;  %v645_v60 = vld [vmem:[#allocation6 + $0x110] sm:$0xff]  ;;  %v612_v61 = vld [vmem:[#allocation6 + $0x8] sm:$0xff]  ;;  %v2802_v62 = vperm.slane %v610_v56, 0  ;;  %v611_v63 = vld [vmem:[#allocation6] sm:$0xff]  ;;  %v2804_v1 = vperm.slane %v610_v56, 1 }
  0x4a   : > { %736 = vmatpush.msra.mxu2 %v622_v40  ;;  %696 = vmatpush.msra.mxu0 %v621_v41  ;;  %v644_v0 = vld [vmem:[#allocation6 + $0x108] sm:$0xff]  ;;  %v643_v2 = vld [vmem:[#allocation6 + $0x100] sm:$0xff]  ;;  %v804_v3 = vld [vmem:[#allocation7 + $0xf0] sm:$0xff] }
  0x4b   : > { %756 = vmatpush.msra.mxu3 %v654_v42  ;;  %716 = vmatpush.msra.mxu1 %v653_v43  ;;  %v805_v4 = vld [vmem:[#allocation7 + $0xf8] sm:$0xff]  ;;  %v802_v5 = vld [vmem:[#allocation7 + $0xe0] sm:$0xff]  ;;  %v836_v6 = vld [vmem:[#allocation7 + $0x1f0] sm:$0xff] }
  0x4c   : > { %737 = vmatpush.msra.mxu2 %v620_v44  ;;  %697 = vmatpush.msra.mxu0 %v619_v45  ;;  %v803_v7 = vld [vmem:[#allocation7 + $0xe8] sm:$0xff]  ;;  %v837_v8 = vld [vmem:[#allocation7 + $0x1f8] sm:$0xff]  ;;  %v800_v9 = vld [vmem:[#allocation7 + $0xd0] sm:$0xff] }
  0x4d   : > { %757 = vmatpush.msra.mxu3 %v652_v46  ;;  %717 = vmatpush.msra.mxu1 %v651_v47  ;;  %v801_v10 = vld [vmem:[#allocation7 + $0xd8] sm:$0xff]  ;;  %v834_v11 = vld [vmem:[#allocation7 + $0x1e0] sm:$0xff]  ;;  %v835_v13 = vld [vmem:[#allocation7 + $0x1e8] sm:$0xff] }
  0x4e   : > { %738 = vmatpush.msra.mxu2 %v618_v48  ;;  %698 = vmatpush.msra.mxu0 %v617_v49  ;;  %v798_v12 = vld [vmem:[#allocation7 + $0xc0] sm:$0xff]  ;;  %v832_v14 = vld [vmem:[#allocation7 + $0x1d0] sm:$0xff]  ;;  %v799_v15 = vld [vmem:[#allocation7 + $0xc8] sm:$0xff]  ;;  %s3256_s27 = smov %s3255_s23  ;;  %s2032_s24 = scalar_lea.hbm %s3255_s23, %s2277_s16 }
  0x4f   : > { %758 = vmatpush.msra.mxu3 %v650_v50  ;;  %718 = vmatpush.msra.mxu1 %v649_v51  ;;  %v833_v16 = vld [vmem:[#allocation7 + $0x1d8] sm:$0xff]  ;;  %v796_v17 = vld [vmem:[#allocation7 + $0xb0] sm:$0xff]  ;;  %v830_v18 = vld [vmem:[#allocation7 + $0x1c0] sm:$0xff] }
  0x50   : > { %739 = vmatpush.msra.mxu2 %v616_v52  ;;  %699 = vmatpush.msra.mxu0 %v615_v53  ;;  %v797_v19 = vld [vmem:[#allocation7 + $0xb8] sm:$0xff]  ;;  %v831_v20 = vld [vmem:[#allocation7 + $0x1c8] sm:$0xff]  ;;  %v794_v21 = vld [vmem:[#allocation7 + $0xa0] sm:$0xff] }
  0x51   : > { %759 = vmatpush.msra.mxu3 %v648_v54  ;;  %719 = vmatpush.msra.mxu1 %v647_v55  ;;  %v828_v22 = vld [vmem:[#allocation7 + $0x1b0] sm:$0xff]  ;;  %v795_v23 = vld [vmem:[#allocation7 + $0xa8] sm:$0xff]  ;;  %v829_v24 = vld [vmem:[#allocation7 + $0x1b8] sm:$0xff] }
  0x52   : > { %740 = vmatpush.msra.mxu2 %v614_v57  ;;  %700 = vmatpush.msra.mxu0 %v613_v58  ;;  %v792_v25 = vld [vmem:[#allocation7 + $0x90] sm:$0xff]  ;;  %v826_v26 = vld [vmem:[#allocation7 + $0x1a0] sm:$0xff]  ;;  %v793_v27 = vld [vmem:[#allocation7 + $0x98] sm:$0xff] }
  0x53   : > { %760 = vmatpush.msra.mxu3 %v646_v59  ;;  %720 = vmatpush.msra.mxu1 %v645_v60  ;;  %v827_v28 = vld [vmem:[#allocation7 + $0x1a8] sm:$0xff]  ;;  %v790_v29 = vld [vmem:[#allocation7 + $0x80] sm:$0xff]  ;;  %v824_v30 = vld [vmem:[#allocation7 + $0x190] sm:$0xff] }
  0x54   : > { %741 = vmatpush.msra.mxu2 %v612_v61  ;;  %701 = vmatpush.msra.mxu0 %v611_v63  ;;  %v791_v31 = vld [vmem:[#allocation7 + $0x88] sm:$0xff]  ;;  %v825_v32 = vld [vmem:[#allocation7 + $0x198] sm:$0xff]  ;;  %v788_v33 = vld [vmem:[#allocation7 + $0x70] sm:$0xff] }
  0x55   : > { %742 = vmatmul.f32.vlgmr.msra.gmra.mxu2 %v2802_v62  ;;  %761 = vmatpush.msra.mxu3 %v644_v0  ;;  %v822_v34 = vld [vmem:[#allocation7 + $0x180] sm:$0xff]  ;;  %v789_v35 = vld [vmem:[#allocation7 + $0x78] sm:$0xff]  ;;  %v823_v36 = vld [vmem:[#allocation7 + $0x188] sm:$0xff] }
  0x56   : > { %702 = vmatmul.f32.vlgmr.msra.gmra.mxu0 %v2802_v62  ;;  %762 = vmatmul.f32.vlgmr.msra.gmra.mxu3 %v2804_v1  ;;  %v786_v37 = vld [vmem:[#allocation7 + $0x60] sm:$0xff]  ;;  %v820_v38 = vld [vmem:[#allocation7 + $0x170] sm:$0xff]  ;;  %v787_v39 = vld [vmem:[#allocation7 + $0x68] sm:$0xff] }
  0x57   : > { %721 = vmatpush.msra.mxu1 %v643_v2  ;;  %844 = vmatpush.msrb.mxu0 %v804_v3  ;;  %v821_v40 = vld [vmem:[#allocation7 + $0x178] sm:$0xff]  ;;  %v784_v41 = vld [vmem:[#allocation7 + $0x50] sm:$0xff]  ;;  %v818_v42 = vld [vmem:[#allocation7 + $0x160] sm:$0xff] }
  0x58   : > { %722 = vmatmul.f32.vlgmr.msra.gmra.mxu1 %v2804_v1  ;;  %884 = vmatpush.msrb.mxu2 %v805_v4  ;;  %v785_v43 = vld [vmem:[#allocation7 + $0x58] sm:$0xff]  ;;  %v819_v44 = vld [vmem:[#allocation7 + $0x168] sm:$0xff]  ;;  %v782_v45 = vld [vmem:[#allocation7 + $0x40] sm:$0xff] }
  0x59   : > { %845 = vmatpush.msrb.mxu0 %v802_v5  ;;  %864 = vmatpush.msrb.mxu1 %v836_v6  ;;  %v783_v46 = vld [vmem:[#allocation7 + $0x48] sm:$0xff]  ;;  %v780_v47 = vld [vmem:[#allocation7 + $0x30] sm:$0xff]  ;;  %v781_v49 = vld [vmem:[#allocation7 + $0x38] sm:$0xff] }
  0x5a   : > { %885 = vmatpush.msrb.mxu2 %v803_v7  ;;  %904 = vmatpush.msrb.mxu3 %v837_v8  ;;  %v816_v48 = vld [vmem:[#allocation7 + $0x150] sm:$0xff]  ;;  %v817_v50 = vld [vmem:[#allocation7 + $0x158] sm:$0xff]  ;;  %v778_v51 = vld [vmem:[#allocation7 + $0x20] sm:$0xff] }
  0x5b   : > { %846 = vmatpush.msrb.mxu0 %v800_v9  ;;  %865 = vmatpush.msrb.mxu1 %v834_v11  ;;  %v814_v52 = vld [vmem:[#allocation7 + $0x140] sm:$0xff]  ;;  %v779_v53 = vld [vmem:[#allocation7 + $0x28] sm:$0xff]  ;;  %v776_v55 = vld [vmem:[#allocation7 + $0x10] sm:$0xff] }
  0x5c   : > { %886 = vmatpush.msrb.mxu2 %v801_v10  ;;  %905 = vmatpush.msrb.mxu3 %v835_v13  ;;  %v815_v54 = vld [vmem:[#allocation7 + $0x148] sm:$0xff]  ;;  %v812_v56 = vld [vmem:[#allocation7 + $0x130] sm:$0xff]  ;;  %v777_v57 = vld [vmem:[#allocation7 + $0x18] sm:$0xff] }
  0x5d   : > { %847 = vmatpush.msrb.mxu0 %v798_v12  ;;  %866 = vmatpush.msrb.mxu1 %v832_v14  ;;  %v813_v58 = vld [vmem:[#allocation7 + $0x138] sm:$0xff]  ;;  %v774_v59 = vld [vmem:[#allocation7] sm:$0xff]  ;;  %v775_v61 = vld [vmem:[#allocation7 + $0x8] sm:$0xff] }
  0x5e   : > { %887 = vmatpush.msrb.mxu2 %v799_v15  ;;  %906 = vmatpush.msrb.mxu3 %v833_v16  ;;  %v810_v60 = vld [vmem:[#allocation7 + $0x120] sm:$0xff]  ;;  %v811_v63 = vld [vmem:[#allocation7 + $0x128] sm:$0xff]  ;;  %v808_v0 = vld [vmem:[#allocation7 + $0x110] sm:$0xff] }
  0x5f   : > { %848 = vmatpush.msrb.mxu0 %v796_v17  ;;  %867 = vmatpush.msrb.mxu1 %v830_v18  ;;  %v809_v2 = vld [vmem:[#allocation7 + $0x118] sm:$0xff]  ;;  %v806_v3 = vld [vmem:[#allocation7 + $0x100] sm:$0xff]  ;;  %v807_v4 = vld [vmem:[#allocation7 + $0x108] sm:$0xff] }
  0x60   : > { %888 = vmatpush.msrb.mxu2 %v797_v19  ;;  %907 = vmatpush.msrb.mxu3 %v831_v20  ;;  %v962_v5 = vld [vmem:[#allocation9 + $0xf0] sm:$0xff]  ;;  %v963_v6 = vld [vmem:[#allocation9 + $0xf8] sm:$0xff]  ;;  %v960_v7 = vld [vmem:[#allocation9 + $0xe0] sm:$0xff] }
  0x61   : > { %849 = vmatpush.msrb.mxu0 %v794_v21  ;;  %868 = vmatpush.msrb.mxu1 %v828_v22  ;;  %v961_v8 = vld [vmem:[#allocation9 + $0xe8] sm:$0xff]  ;;  %v958_v9 = vld [vmem:[#allocation9 + $0xd0] sm:$0xff]  ;;  %v959_v10 = vld [vmem:[#allocation9 + $0xd8] sm:$0xff] }
  0x62   : > { %889 = vmatpush.msrb.mxu2 %v795_v23  ;;  %908 = vmatpush.msrb.mxu3 %v829_v24  ;;  %v994_v11 = vld [vmem:[#allocation9 + $0x1f0] sm:$0xff]  ;;  %v995_v12 = vld [vmem:[#allocation9 + $0x1f8] sm:$0xff]  ;;  %v992_v13 = vld [vmem:[#allocation9 + $0x1e0] sm:$0xff] }
  0x63   : > { %850 = vmatpush.msrb.mxu0 %v792_v25  ;;  %869 = vmatpush.msrb.mxu1 %v826_v26  ;;  %v956_v14 = vld [vmem:[#allocation9 + $0xc0] sm:$0xff]  ;;  %v957_v15 = vld [vmem:[#allocation9 + $0xc8] sm:$0xff]  ;;  %v990_v17 = vld [vmem:[#allocation9 + $0x1d0] sm:$0xff] }
  0x64   : > { %890 = vmatpush.msrb.mxu2 %v793_v27  ;;  %909 = vmatpush.msrb.mxu3 %v827_v28  ;;  %v993_v16 = vld [vmem:[#allocation9 + $0x1e8] sm:$0xff]  ;;  %v991_v18 = vld [vmem:[#allocation9 + $0x1d8] sm:$0xff]  ;;  %v954_v19 = vld [vmem:[#allocation9 + $0xb0] sm:$0xff] }
  0x65   : > { %851 = vmatpush.msrb.mxu0 %v790_v29  ;;  %870 = vmatpush.msrb.mxu1 %v824_v30  ;;  %v955_v20 = vld [vmem:[#allocation9 + $0xb8] sm:$0xff]  ;;  %v988_v21 = vld [vmem:[#allocation9 + $0x1c0] sm:$0xff]  ;;  %v989_v22 = vld [vmem:[#allocation9 + $0x1c8] sm:$0xff] }
  0x66   : > { %891 = vmatpush.msrb.mxu2 %v791_v31  ;;  %910 = vmatpush.msrb.mxu3 %v825_v32  ;;  %v952_v23 = vld [vmem:[#allocation9 + $0xa0] sm:$0xff]  ;;  %v953_v24 = vld [vmem:[#allocation9 + $0xa8] sm:$0xff]  ;;  %v986_v25 = vld [vmem:[#allocation9 + $0x1b0] sm:$0xff] }
  0x67   : > { %852 = vmatpush.msrb.mxu0 %v788_v33  ;;  %871 = vmatpush.msrb.mxu1 %v822_v34  ;;  %v987_v26 = vld [vmem:[#allocation9 + $0x1b8] sm:$0xff]  ;;  %v950_v27 = vld [vmem:[#allocation9 + $0x90] sm:$0xff]  ;;  %v984_v29 = vld [vmem:[#allocation9 + $0x1a0] sm:$0xff] }
  0x68   : > { %892 = vmatpush.msrb.mxu2 %v789_v35  ;;  %911 = vmatpush.msrb.mxu3 %v823_v36  ;;  %v951_v28 = vld [vmem:[#allocation9 + $0x98] sm:$0xff]  ;;  %v985_v30 = vld [vmem:[#allocation9 + $0x1a8] sm:$0xff]  ;;  %v948_v31 = vld [vmem:[#allocation9 + $0x80] sm:$0xff] }
  0x69   : > { %853 = vmatpush.msrb.mxu0 %v786_v37  ;;  %872 = vmatpush.msrb.mxu1 %v820_v38  ;;  %v949_v32 = vld [vmem:[#allocation9 + $0x88] sm:$0xff]  ;;  %v675_v33 = vld [vmem:[%s3206_s4] sm:$0x3]  ;;  %v982_v34 = vld [vmem:[#allocation9 + $0x190] sm:$0xff] }
  0x6a   : > { %893 = vmatpush.msrb.mxu2 %v787_v39  ;;  %912 = vmatpush.msrb.mxu3 %v821_v40  ;;  %v983_v35 = vld [vmem:[#allocation9 + $0x198] sm:$0xff]  ;;  %v946_v36 = vld [vmem:[#allocation9 + $0x70] sm:$0xff]  ;;  %v980_v38 = vld [vmem:[#allocation9 + $0x180] sm:$0xff]  ;;  %v682_v40 = vperm.slane %v675_v33, 0 }
  0x6b   : > { %854 = vmatpush.msrb.mxu0 %v784_v41  ;;  %873 = vmatpush.msrb.mxu1 %v818_v42  ;;  %v947_v37 = vld [vmem:[#allocation9 + $0x78] sm:$0xff]  ;;  %v981_v39 = vld [vmem:[#allocation9 + $0x188] sm:$0xff]  ;;  %v944_v41 = vld [vmem:[#allocation9 + $0x60] sm:$0xff] }
  0x6c   : > { %894 = vmatpush.msrb.mxu2 %v785_v43  ;;  %913 = vmatpush.msrb.mxu3 %v819_v44  ;;  %v945_v42 = vld [vmem:[#allocation9 + $0x68] sm:$0xff]  ;;  %v942_v43 = vld [vmem:[#allocation9 + $0x50] sm:$0xff]  ;;  %v943_v44 = vld [vmem:[#allocation9 + $0x58] sm:$0xff] }
  0x6d   : > { %855 = vmatpush.msrb.mxu0 %v782_v45  ;;  %874 = vmatpush.msrb.mxu1 %v816_v48  ;;  %v769_v48 = vstv %s2813_s0  ;;  %s2036_s0 = sshll.u32 %s2032_s24, 4  ;;  %s2037_s0 = int_to_ptr.hbm [resolvable:$true] %s2036_s0 }
  0x6e   : > { %895 = vmatpush.msrb.mxu2 %v783_v46  ;;  %914 = vmatpush.msrb.mxu3 %v817_v50 }
  0x6f   : > { %856 = vmatpush.msrb.mxu0 %v780_v47  ;;  %875 = vmatpush.msrb.mxu1 %v814_v52 }
  0x70   : > { %896 = vmatpush.msrb.mxu2 %v781_v49  ;;  %915 = vmatpush.msrb.mxu3 %v815_v54  ;;  %v683_v49 = vperm.slane %v675_v33, 1  ;;  %v1102_v33 = vld [vmem:[%s3211_s9 + $0x60] sm:$0xff] }
  0x71   : > { %857 = vmatpush.msrb.mxu0 %v778_v51  ;;  %876 = vmatpush.msrb.mxu1 %v812_v56 }
  0x72   : > { %897 = vmatpush.msrb.mxu2 %v779_v53  ;;  %916 = vmatpush.msrb.mxu3 %v813_v58 }
  0x73   : > { %858 = vmatpush.msrb.mxu0 %v776_v55  ;;  %877 = vmatpush.msrb.mxu1 %v810_v60  ;;  %v978_v60 = vld [vmem:[#allocation9 + $0x170] sm:$0xff] }
  0x74   : > { %898 = vmatpush.msrb.mxu2 %v777_v57  ;;  %917 = vmatpush.msrb.mxu3 %v811_v63  ;;  %v979_v63 = vld [vmem:[#allocation9 + $0x178] sm:$0xff] }
  0x75   : > { %859 = vmatpush.msrb.mxu0 %v774_v59  ;;  %878 = vmatpush.msrb.mxu1 %v808_v0  ;;  %v940_v59 = vld [vmem:[#allocation9 + $0x40] sm:$0xff]  ;;  %v938_v0 = vld [vmem:[#allocation9 + $0x30] sm:$0xff] }
  0x76   : > { %899 = vmatpush.msrb.mxu2 %v775_v61  ;;  %918 = vmatpush.msrb.mxu3 %v809_v2  ;;  %v941_v61 = vld [vmem:[#allocation9 + $0x48] sm:$0xff]  ;;  %v976_v2 = vld [vmem:[#allocation9 + $0x160] sm:$0xff] }
  0x77   : > { %879 = vmatpush.msrb.mxu1 %v806_v3  ;;  %1002 = vmatpush.msra.mxu0 %v962_v5  ;;  %v939_v3 = vld [vmem:[#allocation9 + $0x38] sm:$0xff]  ;;  %v936_v5 = vld [vmem:[#allocation9 + $0x20] sm:$0xff] }
  0x78   : > { %919 = vmatpush.msrb.mxu3 %v807_v4  ;;  %1042 = vmatpush.msra.mxu2 %v963_v6  ;;  %v977_v4 = vld [vmem:[#allocation9 + $0x168] sm:$0xff]  ;;  %v974_v6 = vld [vmem:[#allocation9 + $0x150] sm:$0xff] }
  0x79   : > { %1003 = vmatpush.msra.mxu0 %v960_v7  ;;  %1022 = vmatpush.msra.mxu1 %v994_v11  ;;  %v937_v7 = vld [vmem:[#allocation9 + $0x28] sm:$0xff]  ;;  %v935_v11 = vld [vmem:[#allocation9 + $0x18] sm:$0xff] }
  0x7a   : > { %1043 = vmatpush.msra.mxu2 %v961_v8  ;;  %1062 = vmatpush.msra.mxu3 %v995_v12  ;;  %v975_v8 = vld [vmem:[#allocation9 + $0x158] sm:$0xff]  ;;  %v973_v12 = vld [vmem:[#allocation9 + $0x148] sm:$0xff] }
  0x7b   : > { %1004 = vmatpush.msra.mxu0 %v958_v9  ;;  %1023 = vmatpush.msra.mxu1 %v992_v13  ;;  %v934_v9 = vld [vmem:[#allocation9 + $0x10] sm:$0xff]  ;;  %v932_v13 = vld [vmem:[#allocation9] sm:$0xff] }
  0x7c   : > { %1044 = vmatpush.msra.mxu2 %v959_v10  ;;  %1063 = vmatpush.msra.mxu3 %v993_v16  ;;  %v972_v10 = vld [vmem:[#allocation9 + $0x140] sm:$0xff]  ;;  %v971_v16 = vld [vmem:[#allocation9 + $0x138] sm:$0xff] }
  0x7d   : > { %1005 = vmatpush.msra.mxu0 %v956_v14  ;;  %1024 = vmatpush.msra.mxu1 %v990_v17  ;;  %v970_v14 = vld [vmem:[#allocation9 + $0x130] sm:$0xff]  ;;  %v968_v17 = vld [vmem:[#allocation9 + $0x120] sm:$0xff] }
  0x7e   : > { %1045 = vmatpush.msra.mxu2 %v957_v15  ;;  %1064 = vmatpush.msra.mxu3 %v991_v18  ;;  %v933_v15 = vld [vmem:[#allocation9 + $0x8] sm:$0xff] }
  0x7f   : > { %1006 = vmatpush.msra.mxu0 %v954_v19  ;;  %1025 = vmatpush.msra.mxu1 %v988_v21  ;;  %v969_v18 = vld [vmem:[#allocation9 + $0x128] sm:$0xff]  ;;  %v1166_v19 = vld [vmem:[%s3213_s11 + $0x18] sm:$0xff] }
  0x80   : > { %1046 = vmatpush.msra.mxu2 %v955_v20  ;;  %1065 = vmatpush.msra.mxu3 %v989_v22  ;;  %v966_v20 = vld [vmem:[#allocation9 + $0x110] sm:$0xff]  ;;  %v967_v21 = vld [vmem:[#allocation9 + $0x118] sm:$0xff] }
  0x81   : > { %1007 = vmatpush.msra.mxu0 %v952_v23  ;;  %1026 = vmatpush.msra.mxu1 %v986_v25  ;;  %v1165_v22 = vld [vmem:[%s3213_s11 + $0x10] sm:$0xff]  ;;  %v964_v23 = vld [vmem:[#allocation9 + $0x100] sm:$0xff]  ;;  %v1164_v25 = vld [vmem:[%s3213_s11 + $0x8] sm:$0xff] }
  0x82   : > { %1047 = vmatpush.msra.mxu2 %v953_v24  ;;  %1066 = vmatpush.msra.mxu3 %v987_v26  ;;  %v965_v24 = vld [vmem:[#allocation9 + $0x108] sm:$0xff]  ;;  %v1163_v26 = vld [vmem:[%s3213_s11] sm:$0xff] }
  0x83   : > { %1008 = vmatpush.msra.mxu0 %v950_v27  ;;  %1027 = vmatpush.msra.mxu1 %v984_v29  ;;  %v1105_v27 = vld [vmem:[%s3211_s9 + $0x78] sm:$0xff] }
  0x84   : > { %1048 = vmatpush.msra.mxu2 %v951_v28  ;;  %1067 = vmatpush.msra.mxu3 %v985_v30  ;;  %v1104_v28 = vld [vmem:[%s3211_s9 + $0x70] sm:$0xff]  ;;  %v1121_v29 = vld [vmem:[%s3211_s9 + $0xf8] sm:$0xff]  ;;  %v1103_v30 = vld [vmem:[%s3211_s9 + $0x68] sm:$0xff] }
  0x85   : > { %1009 = vmatpush.msra.mxu0 %v948_v31  ;;  %1028 = vmatpush.msra.mxu1 %v982_v34  ;;  %v1120_v31 = vld [vmem:[%s3211_s9 + $0xf0] sm:$0xff]  ;;  %v1118_v34 = vld [vmem:[%s3211_s9 + $0xe0] sm:$0xff] }
  0x86   : > { %1049 = vmatpush.msra.mxu2 %v949_v32  ;;  %1068 = vmatpush.msra.mxu3 %v983_v35  ;;  %v1119_v32 = vld [vmem:[%s3211_s9 + $0xe8] sm:$0xff]  ;;  %v1101_v35 = vld [vmem:[%s3211_s9 + $0x58] sm:$0xff] }
  0x87   : > { %1010 = vmatpush.msra.mxu0 %v946_v36  ;;  %1029 = vmatpush.msra.mxu1 %v980_v38  ;;  %v1117_v36 = vld [vmem:[%s3211_s9 + $0xd8] sm:$0xff]  ;;  %v1116_v38 = vld [vmem:[%s3211_s9 + $0xd0] sm:$0xff] }
  0x88   : > { %1050 = vmatpush.msra.mxu2 %v947_v37  ;;  %1069 = vmatpush.msra.mxu3 %v981_v39  ;;  %v1100_v37 = vld [vmem:[%s3211_s9 + $0x50] sm:$0xff]  ;;  %v838_v39 = vld [vmem:[%s3208_s6] sm:$0x3] }
  0x89   : > { %1011 = vmatpush.msra.mxu0 %v944_v41  ;;  %1030 = vmatpush.msra.mxu1 %v978_v60  ;;  %v1115_v41 = vld [vmem:[%s3211_s9 + $0xc8] sm:$0xff]  ;;  %v2892_v60 = vld [vmem:[%s2889_s18] sm:$0xff] }
  0x8a   : > { %1051 = vmatpush.msra.mxu2 %v945_v42  ;;  %1070 = vmatpush.msra.mxu3 %v979_v63  ;;  %v1098_v42 = vld [vmem:[%s3211_s9 + $0x40] sm:$0xff] }
  0x8b   : > { %1012 = vmatpush.msra.mxu0 %v942_v43  ;;  %1031 = vmatpush.msra.mxu1 %v976_v2  ;;  %v840_v43 = vperm.slane %v838_v39, 0  ;;  %v1114_v63 = vld [vmem:[%s3211_s9 + $0xc0] sm:$0xff]  ;;  %v1113_v2 = vld [vmem:[%s3211_s9 + $0xb8] sm:$0xff] }
  0x8c   : > { %1052 = vmatpush.msra.mxu2 %v943_v44  ;;  %1071 = vmatpush.msra.mxu3 %v977_v4  ;;  %v1112_v4 = vld [vmem:[%s3211_s9 + $0xb0] sm:$0xff] }
  0x8d   : > { %1013 = vmatpush.msra.mxu0 %v940_v59  ;;  %1032 = vmatpush.msra.mxu1 %v974_v6  ;;  %v1111_v6 = vld [vmem:[%s3211_s9 + $0xa8] sm:$0xff] }
  0x8e   : > { %1053 = vmatpush.msra.mxu2 %v941_v61  ;;  %1072 = vmatpush.msra.mxu3 %v975_v8  ;;  %v1095_v61 = vld [vmem:[%s3211_s9 + $0x28] sm:$0xff]  ;;  %v1110_v8 = vld [vmem:[%s3211_s9 + $0xa0] sm:$0xff] }
  0x8f   : > { %1014 = vmatpush.msra.mxu0 %v938_v0  ;;  %1033 = vmatpush.msra.mxu1 %v972_v10  ;;  %v1094_v0 = vld [vmem:[%s3211_s9 + $0x20] sm:$0xff]  ;;  %v1109_v10 = vld [vmem:[%s3211_s9 + $0x98] sm:$0xff] }
  0x90   : > { %1054 = vmatpush.msra.mxu2 %v939_v3  ;;  %1073 = vmatpush.msra.mxu3 %v973_v12  ;;  %v1093_v3 = vld [vmem:[%s3211_s9 + $0x18] sm:$0xff]  ;;  %v1107_v12 = vld [vmem:[%s3211_s9 + $0x88] sm:$0xff] }
  0x91   : > { %1015 = vmatpush.msra.mxu0 %v936_v5  ;;  %1034 = vmatpush.msra.mxu1 %v970_v14  ;;  %v1092_v5 = vld [vmem:[%s3211_s9 + $0x10] sm:$0xff]  ;;  %v996_v14 = vld [vmem:[%s3210_s8] sm:$0x3] }
  0x92   : > { %1055 = vmatpush.msra.mxu2 %v937_v7  ;;  %1074 = vmatpush.msra.mxu3 %v971_v16  ;;  %v1091_v7 = vld [vmem:[%s3211_s9 + $0x8] sm:$0xff] }
  0x93   : > { %1016 = vmatpush.msra.mxu0 %v934_v9  ;;  %1035 = vmatpush.msra.mxu1 %v968_v17  ;;  %v1090_v9 = vld [vmem:[%s3211_s9] sm:$0xff] }
  0x94   : > { %1056 = vmatpush.msra.mxu2 %v935_v11  ;;  %1075 = vmatpush.msra.mxu3 %v969_v18  ;;  %v1108_v11 = vld [vmem:[%s3211_s9 + $0x90] sm:$0xff] }
  0x95   : > { %1017 = vmatpush.msra.mxu0 %v932_v13  ;;  %1036 = vmatpush.msra.mxu1 %v966_v20  ;;  %v1106_v13 = vld [vmem:[%s3211_s9 + $0x80] sm:$0xff] }
  0x96   : > { %1057 = vmatpush.msra.mxu2 %v933_v15  ;;  %1076 = vmatpush.msra.mxu3 %v967_v21  ;;  %v998_v15 = vperm.slane %v996_v14, 0 }
  0x97   : > { %1037 = vmatpush.msra.mxu1 %v964_v23 }
  0x98   : > { %1077 = vmatpush.msra.mxu3 %v965_v24 }
  0xd3   : > { %v703_v45 = vpop.f32.mrf.mxu0 }
  0xd4   : > { %v704_v46 = vadd.f32 %v703_v45, %v682_v40  ;;  %v1099_v40 = vld [vmem:[%s3211_s9 + $0x48] sm:$0xff]  ;;  %v1097_v45 = vld [vmem:[%s3211_s9 + $0x38] sm:$0xff] }
  0xd5   : > { %v723_v47 = vpop.f32.mrf.mxu1 }
  0xd6   : > { %v724_v50 = vadd.f32 %v723_v47, %v704_v46  ;;  %v1096_v46 = vld [vmem:[%s3211_s9 + $0x30] sm:$0xff] }
  0xd8   : > { %v770_v51 = vmul.f32 %v769_v48, %v724_v50  ;;  %v743_v52 = vpop.f32.mrf.mxu2  ;;  %vm767_vm0 = vcmp.ge.f32.partialorder %v724_v50, 0.0 }
  0xd9   : > { %v744_v53 = vadd.f32 %v743_v52, %v683_v49  ;;  %v763_v54 = vpop.f32.mrf.mxu3  ;;  %v927_v49 = vstv %s2867_s19 }
  0xda   : > { %v772_v55 = vsel %vm767_vm0, %v724_v50, %v770_v51  ;;  %v841_v51 = vperm.slane %v838_v39, 1  ;;  %v1261_v39 = vld [vmem:[%s3215_s13] sm:$0xff] }
  0xdb   : > { %v764_v56 = vadd.f32 %v763_v54, %v744_v53  ;;  %860 = vmatmul.f32.vlgmr.msrb.gmra.mxu0 %v772_v55  ;;  %900 = vmatmul.f32.vlgmr.msrb.gmra.mxu2 %v772_v55 }
  0xdc   : > { %1187 = vmatpush.msrb.mxu2 %v1166_v19  ;;  %1123 = vmatpush.msrb.mxu0 %v1105_v27  ;;  %v1085_v19 = vstv %s2215_s5  ;;  %s3253_s5 = sld [smem:[#allocation19_spill]] }
  0xdd   : > { %v771_v57 = vmul.f32 %v769_v48, %v764_v56  ;;  %vm768_vm1 = vcmp.ge.f32.partialorder %v764_v56, 0.0 }
  0xde   : > { %1188 = vmatpush.msrb.mxu2 %v1165_v22  ;;  %1124 = vmatpush.msrb.mxu0 %v1104_v28  ;;  %v999_v22 = vperm.slane %v996_v14, 1  ;;  %v1367_v14 = vld [vmem:[#allocation6 + $0x3a8] sm:$0xff] }
  0xdf   : > { %v773_v58 = vsel %vm768_vm1, %v764_v56, %v771_v57 }
  0xe0   : > { %880 = vmatmul.f32.vlgmr.msrb.gmra.mxu1 %v773_v58  ;;  %920 = vmatmul.f32.vlgmr.msrb.gmra.mxu3 %v773_v58 }
  0xe1   : > { %1189 = vmatpush.msrb.mxu2 %v1164_v25  ;;  %1143 = vmatpush.msrb.mxu1 %v1121_v29 }
  0xe2   : > { %1125 = vmatpush.msrb.mxu0 %v1103_v30  ;;  %s2992_s26 = sand.u32 1, %s3253_s5  }
  0xe3   : > { %1190 = vmatpush.msrb.mxu2 %v1163_v26  ;;  %1144 = vmatpush.msrb.mxu1 %v1120_v31  ;;  %v2370_v26 = vld [vmem:[%s3214_s12] ss:$0 sm:$0xff]  ;;  %s3230_s19 = sshll.u32 %s2992_s26, 3  ;;  %s2017_s5 = scalar_lea.sflag [#allocation4], %s2992_s26 }
  0xe4   : > { %1126 = vmatpush.msrb.mxu0 %v1102_v33  ;;  %s2998_s28 = scalar_lea.vmem [#allocation10], %s3230_s19  ;;  %s2516_s19 = scalar_lea.hbm %s3256_s27, 16 }
  0xe5   : > { %1145 = vmatpush.msrb.mxu1 %v1119_v32 }
  0xe6   : > { %1127 = vmatpush.msrb.mxu0 %v1101_v35 }
  0xe7   : > { %1146 = vmatpush.msrb.mxu1 %v1118_v34 }
  0xe8   : > { %1128 = vmatpush.msrb.mxu0 %v1100_v37  ;;  %v1262_v37 = vld [vmem:[%s3215_s13 + $0x8] sm:$0xff] }
  0xe9   : > { %1147 = vmatpush.msrb.mxu1 %v1117_v36 }
  0xea   : > { %1129 = vmatpush.msrb.mxu0 %v1099_v40  ;;  %v1342_v40 = vld [vmem:[#allocation6 + $0x2e0] sm:$0xff] }
  0xeb   : > { %1148 = vmatpush.msrb.mxu1 %v1116_v38  ;;  %v1344_v38 = vld [vmem:[#allocation6 + $0x2f0] sm:$0xff] }
  0xec   : > { %1130 = vmatpush.msrb.mxu0 %v1098_v42  ;;  %v1340_v42 = vld [vmem:[#allocation6 + $0x2d0] sm:$0xff] }
  0xed   : > { %1149 = vmatpush.msrb.mxu1 %v1115_v41  ;;  %v1376_v41 = vld [vmem:[#allocation6 + $0x3f0] sm:$0xff] }
  0xee   : > { %1131 = vmatpush.msrb.mxu0 %v1097_v45  ;;  %v1338_v45 = vld [vmem:[#allocation6 + $0x2c0] sm:$0xff] }
  0xef   : > { %1150 = vmatpush.msrb.mxu1 %v1114_v63  ;;  %v1366_v63 = vld [vmem:[#allocation6 + $0x3a0] sm:$0xff] }
  0xf0   : > { %1132 = vmatpush.msrb.mxu0 %v1096_v46  ;;  %v1372_v46 = vld [vmem:[#allocation6 + $0x3d0] sm:$0xff] }
  0xf1   : > { %1151 = vmatpush.msrb.mxu1 %v1113_v2  ;;  %v1373_v2 = vld [vmem:[#allocation6 + $0x3d8] sm:$0xff] }
  0xf2   : > { %1133 = vmatpush.msrb.mxu0 %v1095_v61  ;;  %v1332_v61 = vld [vmem:[#allocation6 + $0x290] sm:$0xff] }
  0xf3   : > { %1152 = vmatpush.msrb.mxu1 %v1112_v4  ;;  %v1364_v4 = vld [vmem:[#allocation6 + $0x390] sm:$0xff] }
  0xf4   : > { %1134 = vmatpush.msrb.mxu0 %v1094_v0  ;;  %v1339_v0 = vld [vmem:[#allocation6 + $0x2c8] sm:$0xff] }
  0xf5   : > { %1153 = vmatpush.msrb.mxu1 %v1111_v6  ;;  %v1371_v6 = vld [vmem:[#allocation6 + $0x3c8] sm:$0xff] }
  0xf6   : > { %1135 = vmatpush.msrb.mxu0 %v1093_v3  ;;  %v1330_v3 = vld [vmem:[#allocation6 + $0x280] sm:$0xff] }
  0xf7   : > { %1154 = vmatpush.msrb.mxu1 %v1110_v8  ;;  %v1362_v8 = vld [vmem:[#allocation6 + $0x380] sm:$0xff] }
  0xf8   : > { %1136 = vmatpush.msrb.mxu0 %v1092_v5  ;;  %v1337_v5 = vld [vmem:[#allocation6 + $0x2b8] sm:$0xff] }
  0xf9   : > { %1155 = vmatpush.msrb.mxu1 %v1109_v10  ;;  %v1369_v10 = vld [vmem:[#allocation6 + $0x3b8] sm:$0xff] }
  0xfa   : > { %1137 = vmatpush.msrb.mxu0 %v1091_v7  ;;  %v1328_v7 = vld [vmem:[#allocation6 + $0x270] sm:$0xff] }
  0xfb   : > { %1156 = vmatpush.msrb.mxu1 %v1108_v11  ;;  %v1326_v11 = vld [vmem:[#allocation6 + $0x260] sm:$0xff] }
  0xfc   : > { %1138 = vmatpush.msrb.mxu0 %v1090_v9  ;;  %v1335_v9 = vld [vmem:[#allocation6 + $0x2a8] sm:$0xff] }
  0xfd   : > { %1157 = vmatpush.msrb.mxu1 %v1107_v12  ;;  %v1360_v12 = vld [vmem:[#allocation6 + $0x370] sm:$0xff] }
  0xff   : > { %1158 = vmatpush.msrb.mxu1 %v1106_v13  ;;  %v1333_v13 = vld [vmem:[#allocation6 + $0x298] sm:$0xff] }
 0x158   : > { %v861_v44 = vpop.f32.mrf.mxu0 }
 0x159   : > { %v862_v47 = vadd.f32 %v861_v44, %v840_v43  ;;  %v1374_v43 = vld [vmem:[#allocation6 + $0x3e0] sm:$0xff]  ;;  %v1345_v44 = vld [vmem:[#allocation6 + $0x2f8] sm:$0xff] }
 0x15d   : > { %v881_v48 = vpop.f32.mrf.mxu1 }
 0x15e   : > { %v882_v50 = vadd.f32 %v881_v48, %v862_v47  ;;  %v901_v52 = vpop.f32.mrf.mxu2 }
 0x15f   : > { %v902_v54 = vadd.f32 %v901_v52, %v841_v51  ;;  %v1336_v52 = vld [vmem:[#allocation6 + $0x2b0] sm:$0xff] }
 0x160   : > { %vm925_vm2 = vcmp.ge.f32.partialorder %v882_v50, 0.0  ;;  %v928_v53 = vmul.f32 %v927_v49, %v882_v50 }
 0x162   : > { %v930_v55 = vsel %vm925_vm2, %v882_v50, %v928_v53  ;;  %v1370_v53 = vld [vmem:[#allocation6 + $0x3c0] sm:$0xff] }
 0x163   : > { %v921_v56 = vpop.f32.mrf.mxu3  ;;  %1018 = vmatmul.f32.vlgmr.msra.gmra.mxu0 %v930_v55  ;;  %1058 = vmatmul.f32.vlgmr.msra.gmra.mxu2 %v930_v55  ;;  %v1377_v55 = vld [vmem:[#allocation6 + $0x3f8] sm:$0xff] }
 0x164   : > { %v922_v57 = vadd.f32 %v921_v56, %v902_v54  ;;  %1425 = vmatpush.msra.mxu0 %v1345_v44  ;;  %v1343_v54 = vld [vmem:[#allocation6 + $0x2e8] sm:$0xff]  ;;  %v1334_v56 = vld [vmem:[#allocation6 + $0x2a0] sm:$0xff] }
 0x165   : > { %v1315_v44 = vld [vmem:[#allocation6 + $0x208] sm:$0xff] }
 0x166   : > { %vm926_vm3 = vcmp.ge.f32.partialorder %v922_v57, 0.0  ;;  %v929_v58 = vmul.f32 %v927_v49, %v922_v57  ;;  %1426 = vmatpush.msra.mxu0 %v1343_v54  ;;  %v1535_v54 = vld [vmem:[#allocation7 + $0x3e8] sm:$0xff] }
 0x168   : > { %v931_v59 = vsel %vm926_vm3, %v922_v57, %v929_v58  ;;  %v1368_v57 = vld [vmem:[#allocation6 + $0x3b0] sm:$0xff]  ;;  %v1341_v58 = vld [vmem:[#allocation6 + $0x2d8] sm:$0xff] }
 0x169   : > { %1038 = vmatmul.f32.vlgmr.msra.gmra.mxu1 %v931_v59  ;;  %1078 = vmatmul.f32.vlgmr.msra.gmra.mxu3 %v931_v59  ;;  %v1375_v59 = vld [vmem:[#allocation6 + $0x3e8] sm:$0xff] }
 0x16a   : > { %1445 = vmatpush.msra.mxu1 %v1377_v55  ;;  %1427 = vmatpush.msra.mxu0 %v1341_v58  ;;  %v1501_v55 = vld [vmem:[#allocation7 + $0x2d8] sm:$0xff]  ;;  %v1499_v58 = vld [vmem:[#allocation7 + $0x2c8] sm:$0xff] }
 0x16b   : > { %2216 = vmatmul.msk.f32.vlgmr.msrb.gmra.mxu2 %vm1171_vm4, %v2892_v60 }
 0x16c   : > { %1446 = vmatpush.msra.mxu1 %v1375_v59  ;;  %1428 = vmatpush.msra.mxu0 %v1339_v0  ;;  %v1531_v59 = vld [vmem:[#allocation7 + $0x3c8] sm:$0xff]  ;;  %v1492_v0 = vld [vmem:[#allocation7 + $0x290] sm:$0xff] }
 0x16e   : > { %1447 = vmatpush.msra.mxu1 %v1373_v2  ;;  %1429 = vmatpush.msra.mxu0 %v1337_v5  ;;  %v1529_v2 = vld [vmem:[#allocation7 + $0x3b8] sm:$0xff]  ;;  %v1527_v5 = vld [vmem:[#allocation7 + $0x3a8] sm:$0xff] }
 0x170   : > { %1448 = vmatpush.msra.mxu1 %v1371_v6  ;;  %1430 = vmatpush.msra.mxu0 %v1335_v9  ;;  %v1493_v6 = vld [vmem:[#allocation7 + $0x298] sm:$0xff]  ;;  %v1491_v9 = vld [vmem:[#allocation7 + $0x288] sm:$0xff] }
 0x172   : > { %1449 = vmatpush.msra.mxu1 %v1369_v10  ;;  %1431 = vmatpush.msra.mxu0 %v1333_v13  ;;  %v1523_v10 = vld [vmem:[#allocation7 + $0x388] sm:$0xff] }
 0x174   : > { %1450 = vmatpush.msra.mxu1 %v1367_v14  ;;  %v1521_v14 = vld [vmem:[#allocation7 + $0x378] sm:$0xff] }
 0x1e0   : > { %v1019_v16 = vpop.f32.mrf.mxu0 }
 0x1e1   : > { %v1020_v17 = vadd.f32 %v1019_v16, %v998_v15  ;;  %v1324_v15 = vld [vmem:[#allocation6 + $0x250] sm:$0xff]  ;;  %v1358_v16 = vld [vmem:[#allocation6 + $0x360] sm:$0xff] }
 0x1e6   : > { %v1039_v18 = vpop.f32.mrf.mxu1  ;;  %v1059_v20 = vpop.f32.mrf.mxu2 }
 0x1e7   : > { %v1040_v21 = vadd.f32 %v1039_v18, %v1020_v17  ;;  %v1060_v24 = vadd.f32 %v1059_v20, %v999_v22  ;;  %v1331_v17 = vld [vmem:[#allocation6 + $0x288] sm:$0xff]  ;;  %v1365_v18 = vld [vmem:[#allocation6 + $0x398] sm:$0xff]  ;;  %v1356_v20 = vld [vmem:[#allocation6 + $0x350] sm:$0xff] }
 0x1e8   : > { %1432 = vmatpush.msra.mxu0 %v1331_v17  ;;  %1451 = vmatpush.msra.mxu1 %v1365_v18  ;;  %v1363_v22 = vld [vmem:[#allocation6 + $0x388] sm:$0xff]  ;;  %v1534_v17 = vld [vmem:[#allocation7 + $0x3e0] sm:$0xff]  ;;  %v1532_v18 = vld [vmem:[#allocation7 + $0x3d0] sm:$0xff] }
 0x1e9   : > { %vm1083_vm5 = vcmp.ge.f32.partialorder %v1040_v21, 0.0  ;;  %v1086_v23 = vmul.f32 %v1085_v19, %v1040_v21 }
 0x1ea   : > { %1452 = vmatpush.msra.mxu1 %v1363_v22  ;;  %v1524_v22 = vld [vmem:[#allocation7 + $0x390] sm:$0xff] }
 0x1eb   : > { %v1088_v25 = vsel %vm1083_vm5, %v1040_v21, %v1086_v23  ;;  %v1329_v21 = vld [vmem:[#allocation6 + $0x278] sm:$0xff]  ;;  %v1320_v23 = vld [vmem:[#allocation6 + $0x230] sm:$0xff] }
 0x1ec   : > { %v1079_v27 = vpop.f32.mrf.mxu3  ;;  %1139 = vmatmul.f32.vlgmr.msrb.gmra.mxu0 %v1088_v25  ;;  %v1327_v25 = vld [vmem:[#allocation6 + $0x268] sm:$0xff] }
 0x1ed   : > { %v1080_v28 = vadd.f32 %v1079_v27, %v1060_v24  ;;  %1433 = vmatpush.msra.mxu0 %v1329_v21  ;;  %v1354_v24 = vld [vmem:[#allocation6 + $0x340] sm:$0xff] }
 0x1ee   : > { %v1192_v29 = vpop.f32.mrf.mxu2  ;;  %v1318_v27 = vld [vmem:[#allocation6 + $0x220] sm:$0xff] }
 0x1ef   : > { %vm1084_vm6 = vcmp.ge.f32.partialorder %v1080_v28, 0.0  ;;  %v1087_v30 = vmul.f32 %v1085_v19, %v1080_v28  ;;  %v1193_v31 = vadd.f32 %v2370_v26, %v1192_v29  ;;  %v1322_v19 = vld [vmem:[#allocation6 + $0x240] sm:$0xff]  ;;  %v1361_v26 = vld [vmem:[#allocation6 + $0x378] sm:$0xff]  ;;  %1434 = vmatpush.msra.mxu0 %v1327_v25 }
 0x1f0   : > { %1453 = vmatpush.msra.mxu1 %v1361_v26  ;;  %v1325_v29 = vld [vmem:[#allocation6 + $0x258] sm:$0xff]  ;;  %v1526_v21 = vld [vmem:[#allocation7 + $0x3a0] sm:$0xff] }
 0x1f1   : > { %1230 = vrot.lane.b32.xlu1 %v1193_v31, %s2610_s20  ;;  %1196 = vrot.lane.b32.xlu0 %v1193_v31, %s2611_s30  ;;  %v1089_v32 = vsel %vm1084_vm6, %v1080_v28, %v1087_v30  ;;  %v1352_v28 = vld [vmem:[#allocation6 + $0x330] sm:$0xff]  ;;  %v1359_v30 = vld [vmem:[#allocation6 + $0x368] sm:$0xff]  ;;  %v1486_v26 = vld [vmem:[#allocation7 + $0x260] sm:$0xff] }
 0x1f2   : > { %1159 = vmatmul.f32.vlgmr.msrb.gmra.mxu1 %v1089_v32  ;;  %v1350_v32 = vld [vmem:[#allocation6 + $0x320] sm:$0xff]  ;;  %1435 = vmatpush.msra.mxu0 %v1325_v29 }
 0x1f3   : > { %1454 = vmatpush.msra.mxu1 %v1359_v30  ;;  %v1519_v30 = vld [vmem:[#allocation7 + $0x368] sm:$0xff] }
 0x263   : > { %v1231_v33 = vpop.permute.xlu1 %1230  ;;  %v1197_v34 = vpop.permute.xlu0 %1196 }
 0x264   : > { %2217 = vmatpush.xpose.msk.msrb.mxu3 %vm1198_vm7, %v1197_v34  ;;  %1251 = vmatpush.msra.mxu2 %v1231_v33  ;;  %v1323_v33 = vld [vmem:[#allocation6 + $0x248] sm:$0xff]  ;;  %v1357_v34 = vld [vmem:[#allocation6 + $0x358] sm:$0xff] }
 0x265   : > { %1436 = vmatpush.msra.mxu0 %v1323_v33  ;;  %1455 = vmatpush.msra.mxu1 %v1357_v34  ;;  %v1517_v33 = vld [vmem:[#allocation7 + $0x358] sm:$0xff]  ;;  %v1482_v34 = vld [vmem:[#allocation7 + $0x240] sm:$0xff] }
 0x266   : > { %1385 = vmatpush.msrb.mxu2 %v1344_v38  ;;  %v1355_v38 = vld [vmem:[#allocation6 + $0x348] sm:$0xff] }
 0x267   : > { %2218 = vmatmul.msk.f32.vlgmr.msrb.gmra.mxu3 %vm1198_vm7, %v1193_v31  ;;  %v1316_v31 = vld [vmem:[#allocation6 + $0x210] sm:$0xff]  ;;  %1456 = vmatpush.msra.mxu1 %v1355_v38  ;;  %v2974_v38 = vld [vmem:[%s3206_s4 + $0x2] sm:$0x3] }
 0x268   : > { %1284 = vmatpush.msra.mxu3 %v1262_v37  ;;  %1386 = vmatpush.msrb.mxu2 %v1342_v40  ;;  %v1321_v37 = vld [vmem:[#allocation6 + $0x238] sm:$0xff]  ;;  %v1319_v40 = vld [vmem:[#allocation6 + $0x228] sm:$0xff] }
 0x269   : > { %1437 = vmatpush.msra.mxu0 %v1321_v37  ;;  %v2965_v25 = vpop.f32.mrf.mxu0  ;;  %v1515_v37 = vld [vmem:[#allocation7 + $0x348] sm:$0xff] }
 0x26a   : > { %1285 = vmatpush.msra.mxu3 %v1261_v39  ;;  %1387 = vmatpush.msrb.mxu2 %v1340_v42  ;;  %v1346_v39 = vld [vmem:[#allocation6 + $0x300] sm:$0xff]  ;;  %v1317_v42 = vld [vmem:[#allocation6 + $0x218] sm:$0xff] }
 0x26b   : > { %1438 = vmatpush.msra.mxu0 %v1319_v40  ;;  %v1480_v40 = vld [vmem:[#allocation7 + $0x230] sm:$0xff] }
 0x26c   : > { %1405 = vmatpush.msrb.mxu3 %v1376_v41  ;;  %1388 = vmatpush.msrb.mxu2 %v1338_v45  ;;  %v1353_v41 = vld [vmem:[#allocation6 + $0x338] sm:$0xff] }
 0x26d   : > { %1457 = vmatpush.msra.mxu1 %v1353_v41  ;;  %v1349_v45 = vld [vmem:[#allocation6 + $0x318] sm:$0xff]  ;;  %1439 = vmatpush.msra.mxu0 %v1317_v42  ;;  %v1512_v41 = vld [vmem:[#allocation7 + $0x330] sm:$0xff] }
 0x26e   : > { %1406 = vmatpush.msrb.mxu3 %v1374_v43  ;;  %1389 = vmatpush.msrb.mxu2 %v1336_v52  ;;  %v1351_v43 = vld [vmem:[#allocation6 + $0x328] sm:$0xff]  ;;  %v1481_v42 = vld [vmem:[#allocation7 + $0x238] sm:$0xff] }
 0x26f   : > { %1458 = vmatpush.msra.mxu1 %v1351_v43  ;;  %1440 = vmatpush.msra.mxu0 %v1315_v44  ;;  %v1503_v52 = vld [vmem:[#allocation7 + $0x2e8] sm:$0xff]  ;;  %v2967_v29 = vpop.f32.mrf.mxu1  ;;  %v1513_v44 = vld [vmem:[#allocation7 + $0x338] sm:$0xff] }
 0x270   : > { %1407 = vmatpush.msrb.mxu3 %v1372_v46  ;;  %1390 = vmatpush.msrb.mxu2 %v1334_v56  ;;  %v1504_v46 = vld [vmem:[#allocation7 + $0x2f0] sm:$0xff] }
 0x271   : > { %1459 = vmatpush.msra.mxu1 %v1349_v45  ;;  %1441 = vmatmul.f32.vlgmr.msra.gmra.mxu0 %v2802_v62  ;;  %v1496_v56 = vld [vmem:[#allocation7 + $0x2b0] sm:$0xff] }
 0x272   : > { %1408 = vmatpush.msrb.mxu3 %v1370_v53  ;;  %1391 = vmatpush.msrb.mxu2 %v1332_v61  ;;  %v1498_v53 = vld [vmem:[#allocation7 + $0x2c0] sm:$0xff]  ;;  %v1497_v61 = vld [vmem:[#allocation7 + $0x2b8] sm:$0xff] }
 0x274   : > { %1409 = vmatpush.msrb.mxu3 %v1368_v57  ;;  %1392 = vmatpush.msrb.mxu2 %v1330_v3  ;;  %v1533_v57 = vld [vmem:[#allocation7 + $0x3d8] sm:$0xff]  ;;  %v1495_v3 = vld [vmem:[#allocation7 + $0x2a8] sm:$0xff] }
 0x276   : > { %1410 = vmatpush.msrb.mxu3 %v1366_v63  ;;  %1393 = vmatpush.msrb.mxu2 %v1328_v7  ;;  %v1488_v7 = vld [vmem:[#allocation7 + $0x270] sm:$0xff] }
 0x278   : > { %1411 = vmatpush.msrb.mxu3 %v1364_v4  ;;  %1394 = vmatpush.msrb.mxu2 %v1326_v11  ;;  %v1490_v4 = vld [vmem:[#allocation7 + $0x280] sm:$0xff]  ;;  %v1489_v11 = vld [vmem:[#allocation7 + $0x278] sm:$0xff] }
 0x27a   : > { %1412 = vmatpush.msrb.mxu3 %v1362_v8  ;;  %1395 = vmatpush.msrb.mxu2 %v1324_v15  ;;  %v1525_v8 = vld [vmem:[#allocation7 + $0x398] sm:$0xff] }
 0x27c   : > { %1413 = vmatpush.msrb.mxu3 %v1360_v12  ;;  %1396 = vmatpush.msrb.mxu2 %v1322_v19  ;;  %v1530_v19 = vld [vmem:[#allocation7 + $0x3c0] sm:$0xff] }
 0x27e   : > { %1414 = vmatpush.msrb.mxu3 %v1358_v16  ;;  %1397 = vmatpush.msrb.mxu2 %v1320_v23  ;;  %v1536_v16 = vld [vmem:[#allocation7 + $0x3f0] sm:$0xff]  ;;  %v1522_v23 = vld [vmem:[#allocation7 + $0x380] sm:$0xff] }
 0x280   : > { %1415 = vmatpush.msrb.mxu3 %v1356_v20  ;;  %1398 = vmatpush.msrb.mxu2 %v1318_v27  ;;  %v1528_v20 = vld [vmem:[#allocation7 + $0x3b0] sm:$0xff]  ;;  %v1518_v27 = vld [vmem:[#allocation7 + $0x360] sm:$0xff] }
 0x282   : > { %1416 = vmatpush.msrb.mxu3 %v1354_v24  ;;  %1399 = vmatpush.msrb.mxu2 %v1316_v31  ;;  %v1520_v24 = vld [vmem:[#allocation7 + $0x370] sm:$0xff] }
 0x283   : > { %v1516_v31 = vld [vmem:[#allocation7 + $0x350] sm:$0xff] }
 0x284   : > { %1417 = vmatpush.msrb.mxu3 %v1352_v28  ;;  %v1487_v28 = vld [vmem:[#allocation7 + $0x268] sm:$0xff] }
 0x286   : > { %1418 = vmatpush.msrb.mxu3 %v1350_v32  ;;  %v1485_v32 = vld [vmem:[#allocation7 + $0x258] sm:$0xff] }
 0x2ea   : > { %v1220_v35 = vpop.f32.mrf.mxu3 }
 0x2eb   : > { %v1224_v36 = vsel %vm1223_vm8, %v1220_v35, -inf }
 0x2ec   : > { %1225 = vmax.xlane.f32.xlu0 %v1224_v36  ;;  %v1348_v36 = vld [vmem:[#allocation6 + $0x310] sm:$0xff] }
 0x2ed   : > { %1419 = vmatpush.msrb.mxu3 %v1348_v36  ;;  %v1483_v36 = vld [vmem:[#allocation7 + $0x248] sm:$0xff] }
 0x2ee   : > { %v1442_v43 = vpop.f32.mrf.mxu0 }
 0x2ef   : > { %1420 = vmatpush.msrb.mxu3 %v1346_v39  ;;  %v1382_v39 = vperm.slane %v2974_v38, 1 }
 0x2f1   : > { %v1443_v45 = vadd.f32 %v1442_v43, %v1382_v39  ;;  %v1683_v39 = vld [vmem:[#allocation9 + $0x388] sm:$0xff]  ;;  %v1681_v43 = vld [vmem:[#allocation9 + $0x378] sm:$0xff] }
 0x35f   : > { %v1226_v47 = vpop.xlane.xlu0 %1225 }
 0x360   : > { %v1227_v48 = vsub.f32 %v1220_v35, %v1226_v47  ;;  %v1314_v35 = vld [vmem:[#allocation6 + $0x200] sm:$0xff]  ;;  %v1347_v47 = vld [vmem:[#allocation6 + $0x308] sm:$0xff] }
 0x361   : > { %1400 = vmatpush.msrb.mxu2 %v1314_v35  ;;  %1460 = vmatpush.msra.mxu1 %v1347_v47  ;;  %v1514_v35 = vld [vmem:[#allocation7 + $0x340] sm:$0xff] }
 0x362   : > { %v1228_v49 = vmul.f32 1.442695, %v1227_v48  ;;  %v1505_v48 = vld [vmem:[#allocation7 + $0x2f8] sm:$0xff]  ;;  %1461 = vmatmul.f32.vlgmr.msra.gmra.mxu1 %v2804_v1  ;;  %v1510_v47 = vld [vmem:[#allocation7 + $0x320] sm:$0xff] }
 0x363   : > { %1585 = vmatpush.msrb.mxu0 %v1505_v48  ;;  %v1479_v48 = vld [vmem:[#allocation7 + $0x228] sm:$0xff] }
 0x364   : > { %2374 = vpow2.f32 %v1228_v49  ;;  %v1502_v49 = vld [vmem:[#allocation7 + $0x2e0] sm:$0xff] }
 0x365   : > { %1586 = vmatpush.msrb.mxu0 %v1503_v52 }
 0x367   : > { %1587 = vmatpush.msrb.mxu0 %v1501_v55  ;;  %v1477_v55 = vld [vmem:[#allocation7 + $0x218] sm:$0xff] }
 0x369   : > { %1588 = vmatpush.msrb.mxu0 %v1499_v58  ;;  %v1474_v58 = vld [vmem:[#allocation7 + $0x200] sm:$0xff] }
 0x36a   : > { %v2375_v50 = vpop.eup %2374 }
 0x36b   : > { %2219 = vmatmul.msk.f32.vlgmr.msra.gmra.mxu2 %vm1223_vm8, %v2375_v50  ;;  %v1256_v51 = vsel %vm1223_vm8, %v2375_v50, 0.0  ;;  %v1500_v50 = vld [vmem:[#allocation7 + $0x2d0] sm:$0xff]  ;;  %1589 = vmatpush.msrb.mxu0 %v1497_v61  ;;  %v1507_v61 = vld [vmem:[#allocation7 + $0x308] sm:$0xff] }
 0x36c   : > { %1257 = vadd.xlane.f32.xlu1 %v1256_v51  ;;  %1545 = vmatpush.msra.mxu2 %v1504_v46  ;;  %v1537_v51 = vld [vmem:[#allocation7 + $0x3f8] sm:$0xff]  ;;  %v1478_v46 = vld [vmem:[#allocation7 + $0x220] sm:$0xff] }
 0x36d   : > { %1605 = vmatpush.msrb.mxu1 %v1537_v51  ;;  %1590 = vmatpush.msrb.mxu0 %v1495_v3  ;;  %v1468_v51 = vstv %s2969_s15  ;;  %v1697_v3 = vld [vmem:[#allocation9 + $0x3f8] sm:$0xff] }
 0x36e   : > { %1546 = vmatpush.msra.mxu2 %v1502_v49 }
 0x36f   : > { %1606 = vmatpush.msrb.mxu1 %v1535_v54  ;;  %1591 = vmatpush.msrb.mxu0 %v1493_v6  ;;  %v1508_v54 = vld [vmem:[#allocation7 + $0x310] sm:$0xff] }
 0x370   : > { %1547 = vmatpush.msra.mxu2 %v1500_v50  ;;  %v1511_v50 = vld [vmem:[#allocation7 + $0x328] sm:$0xff]  ;;  %v1692_v6 = vld [vmem:[#allocation9 + $0x3d0] sm:$0xff] }
 0x371   : > { %1607 = vmatpush.msrb.mxu1 %v1533_v57  ;;  %1592 = vmatpush.msrb.mxu0 %v1491_v9  ;;  %v1664_v9 = vld [vmem:[#allocation9 + $0x2f0] sm:$0xff] }
 0x372   : > { %1548 = vmatpush.msra.mxu2 %v1498_v53  ;;  %v1476_v53 = vld [vmem:[#allocation7 + $0x210] sm:$0xff] }
 0x373   : > { %1401 = vmatmul.f32.vlgmr.msrb.gmra.mxu2 %v2802_v62  ;;  %v1494_v62 = vld [vmem:[#allocation7 + $0x2a0] sm:$0xff]  ;;  %1608 = vmatpush.msrb.mxu1 %v1531_v59  ;;  %v1475_v59 = vld [vmem:[#allocation7 + $0x208] sm:$0xff] }
 0x374   : > { %1549 = vmatpush.msra.mxu2 %v1496_v56  ;;  %1593 = vmatpush.msrb.mxu0 %v1489_v11  ;;  %v1509_v56 = vld [vmem:[#allocation7 + $0x318] sm:$0xff]  ;;  %v2371_v11 = vld [vmem:[%s3216_s14] ss:$0 sm:$0xff] }
 0x375   : > { %1609 = vmatpush.msrb.mxu1 %v1529_v2  ;;  %v1696_v2 = vld [vmem:[#allocation9 + $0x3f0] sm:$0xff] }
 0x376   : > { %1550 = vmatpush.msra.mxu2 %v1494_v62  ;;  %1594 = vmatpush.msrb.mxu0 %v1487_v28  ;;  %v1506_v62 = vld [vmem:[#allocation7 + $0x300] sm:$0xff]  ;;  %v1687_v28 = vld [vmem:[#allocation9 + $0x3a8] sm:$0xff] }
 0x377   : > { %1610 = vmatpush.msrb.mxu1 %v1527_v5  ;;  %v1695_v5 = vld [vmem:[#allocation9 + $0x3e8] sm:$0xff] }
 0x378   : > { %1551 = vmatpush.msra.mxu2 %v1492_v0  ;;  %1595 = vmatpush.msrb.mxu0 %v1485_v32  ;;  %v1122_v0 = vld [vmem:[%s3212_s10] sm:$0x1]  ;;  %v1684_v32 = vld [vmem:[#allocation9 + $0x390] sm:$0xff] }
 0x379   : > { %1611 = vmatpush.msrb.mxu1 %v1525_v8  ;;  %v1693_v8 = vld [vmem:[#allocation9 + $0x3d8] sm:$0xff] }
 0x37a   : > { %1552 = vmatpush.msra.mxu2 %v1490_v4  ;;  %1596 = vmatpush.msrb.mxu0 %v1483_v36  ;;  %v1694_v4 = vld [vmem:[#allocation9 + $0x3e0] sm:$0xff] }
 0x37b   : > { %1612 = vmatpush.msrb.mxu1 %v1523_v10  ;;  %v1665_v10 = vld [vmem:[#allocation9 + $0x2f8] sm:$0xff] }
 0x37c   : > { %1553 = vmatpush.msra.mxu2 %v1488_v7  ;;  %1597 = vmatpush.msrb.mxu0 %v1481_v42  ;;  %v1141_v7 = vadd.f32 %v2965_v25, %v1122_v0  ;;  %v1680_v42 = vld [vmem:[#allocation9 + $0x370] sm:$0xff] }
 0x37d   : > { %1613 = vmatpush.msrb.mxu1 %v1521_v14  ;;  %v1690_v14 = vld [vmem:[#allocation9 + $0x3c0] sm:$0xff] }
 0x37e   : > { %1554 = vmatpush.msra.mxu2 %v1486_v26  ;;  %1598 = vmatpush.msrb.mxu0 %v1479_v48  ;;  %v1381_v26 = vperm.slane %v2974_v38, 0  ;;  %v1682_v38 = vld [vmem:[#allocation9 + $0x380] sm:$0xff] }
 0x37f   : > { %1614 = vmatpush.msrb.mxu1 %v1519_v30  ;;  %v1656_v30 = vld [vmem:[#allocation9 + $0x2b0] sm:$0xff]  ;;  %v1678_v48 = vld [vmem:[#allocation9 + $0x360] sm:$0xff] }
 0x380   : > { %1599 = vmatpush.msrb.mxu0 %v1477_v55  ;;  %v1677_v55 = vld [vmem:[#allocation9 + $0x358] sm:$0xff] }
 0x381   : > { %1615 = vmatpush.msrb.mxu1 %v1517_v33  ;;  %v1685_v33 = vld [vmem:[#allocation9 + $0x398] sm:$0xff] }
 0x382   : > { %1600 = vmatpush.msrb.mxu0 %v1475_v59  ;;  %v1675_v59 = vld [vmem:[#allocation9 + $0x348] sm:$0xff] }
 0x383   : > { %1616 = vmatpush.msrb.mxu1 %v1515_v37 }
 0x384   : > { %1745 = vmatpush.msra.mxu0 %v1665_v10  ;;  %v1672_v10 = vld [vmem:[#allocation9 + $0x330] sm:$0xff] }
 0x385   : > { %1617 = vmatpush.msrb.mxu1 %v1513_v44 }
 0x387   : > { %1618 = vmatpush.msrb.mxu1 %v1511_v50  ;;  %v1648_v50 = vld [vmem:[#allocation9 + $0x270] sm:$0xff] }
 0x389   : > { %1619 = vmatpush.msrb.mxu1 %v1509_v56 }
 0x38b   : > { %1620 = vmatpush.msrb.mxu1 %v1507_v61 }
 0x38d   : > { %1765 = vmatpush.msra.mxu1 %v1697_v3 }
 0x38f   : > { %1766 = vmatpush.msra.mxu1 %v1695_v5 }
 0x391   : > { %1767 = vmatpush.msra.mxu1 %v1693_v8 }
 0x3df   : > { %v1258_v63 = vpop.xlane.xlu1 %1257  ;;  %v1462_v49 = vpop.f32.mrf.mxu1 }
 0x3e0   : > { %2376 = vrcp.f32 %v1258_v63  ;;  %v1463_v52 = vadd.f32 %v1462_v49, %v1443_v45  ;;  %v1650_v45 = vld [vmem:[#allocation9 + $0x280] sm:$0xff]  ;;  %v1679_v49 = vld [vmem:[#allocation9 + $0x368] sm:$0xff] }
 0x3e2   : > { %vm1467_vm9 = vcmp.ge.f32.partialorder %v1463_v52, 0.0  ;;  %v1470_v57 = vmul.f32 %v1468_v51, %v1463_v52 }
 0x3e4   : > { %v1472_v63 = vsel %vm1467_vm9, %v1463_v52, %v1470_v57  ;;  %v1649_v52 = vld [vmem:[#allocation9 + $0x278] sm:$0xff] }
 0x3e5   : > { %1621 = vmatmul.f32.vlgmr.msrb.gmra.mxu1 %v1472_v63 }
 0x3e6   : > { %v2377_v12 = vpop.eup %2376 }
 0x3ee   : > { %v1253_v13 = vpop.f32.mrf.mxu2 }
 0x3ef   : > { %v1260_v15 = vmul.f32 %v2377_v12, %v1253_v13  ;;  %v1662_v12 = vld [vmem:[#allocation9 + $0x2e0] sm:$0xff]  ;;  %v1161_v13 = vadd.f32 %v2967_v29, %v1141_v7 }
 0x3f1   : > { %2220 = vmatmul.msk.f32.vlgmr.msra.gmra.mxu3 %vm1198_vm7, %v1260_v15  ;;  %v1691_v15 = vld [vmem:[#allocation9 + $0x3c8] sm:$0xff] }
 0x3f2   : > { %1565 = vmatpush.msra.mxu3 %v1536_v16  ;;  %v1663_v16 = vld [vmem:[#allocation9 + $0x2e8] sm:$0xff]  ;;  %1768 = vmatpush.msra.mxu1 %v1691_v15  ;;  %v1645_v15 = vld [vmem:[#allocation9 + $0x258] sm:$0xff] }
 0x3f3   : > { %1746 = vmatpush.msra.mxu0 %v1663_v16  ;;  %v1642_v16 = vld [vmem:[#allocation9 + $0x240] sm:$0xff] }
 0x3f4   : > { %1566 = vmatpush.msra.mxu3 %v1534_v17  ;;  %v1660_v17 = vld [vmem:[#allocation9 + $0x2d0] sm:$0xff] }
 0x3f6   : > { %1567 = vmatpush.msra.mxu3 %v1532_v18  ;;  %v1661_v18 = vld [vmem:[#allocation9 + $0x2d8] sm:$0xff]  ;;  %v1402_v29 = vpop.f32.mrf.mxu2 }
 0x3f7   : > { %1747 = vmatpush.msra.mxu0 %v1661_v18  ;;  %v1403_v37 = vadd.f32 %v1402_v29, %v1381_v26  ;;  %v1643_v18 = vld [vmem:[#allocation9 + $0x248] sm:$0xff]  ;;  %v1636_v26 = vld [vmem:[#allocation9 + $0x210] sm:$0xff] }
 0x3f8   : > { %1568 = vmatpush.msra.mxu3 %v1530_v19  ;;  %v1688_v19 = vld [vmem:[#allocation9 + $0x3b0] sm:$0xff]  ;;  %v1635_v29 = vld [vmem:[#allocation9 + $0x208] sm:$0xff] }
 0x3f9   : > { %1421 = vmatmul.f32.vlgmr.msrb.gmra.mxu3 %v2804_v1  ;;  %v1484_v1 = vld [vmem:[#allocation7 + $0x250] sm:$0xff] }
 0x3fa   : > { %1569 = vmatpush.msra.mxu3 %v1528_v20  ;;  %1555 = vmatpush.msra.mxu2 %v1484_v1  ;;  %v1689_v20 = vld [vmem:[#allocation9 + $0x3b8] sm:$0xff] }
 0x3fb   : > { %1769 = vmatpush.msra.mxu1 %v1689_v20  ;;  %v1657_v1 = vld [vmem:[#allocation9 + $0x2b8] sm:$0xff]  ;;  %v1640_v20 = vld [vmem:[#allocation9 + $0x230] sm:$0xff] }
 0x3fc   : > { %1570 = vmatpush.msra.mxu3 %v1526_v21  ;;  %1556 = vmatpush.msra.mxu2 %v1482_v34  ;;  %v1654_v34 = vld [vmem:[#allocation9 + $0x2a0] sm:$0xff] }
 0x3fd   : > { %1770 = vmatpush.msra.mxu1 %v1687_v28  ;;  %v1634_v28 = vld [vmem:[#allocation9 + $0x200] sm:$0xff] }
 0x3fe   : > { %1571 = vmatpush.msra.mxu3 %v1524_v22  ;;  %1557 = vmatpush.msra.mxu2 %v1480_v40  ;;  %v1658_v22 = vld [vmem:[#allocation9 + $0x2c0] sm:$0xff]  ;;  %v1652_v40 = vld [vmem:[#allocation9 + $0x290] sm:$0xff] }
 0x3ff   : > { %1771 = vmatpush.msra.mxu1 %v1685_v33  ;;  %v2259_v33 = vld [vmem:[%s3211_s9 + $0x1f8] sm:$0xff] }
 0x400   : > { %1572 = vmatpush.msra.mxu3 %v1522_v23  ;;  %1558 = vmatpush.msra.mxu2 %v1478_v46  ;;  %v1659_v23 = vld [vmem:[#allocation9 + $0x2c8] sm:$0xff] }
 0x401   : > { %1748 = vmatpush.msra.mxu0 %v1659_v23  ;;  %1772 = vmatpush.msra.mxu1 %v1683_v39  ;;  %v1651_v46 = vld [vmem:[#allocation9 + $0x288] sm:$0xff]  ;;  %v2224_v39 = vld [vmem:[%s3208_s6 + $0x2] sm:$0x3] }
 0x402   : > { %1573 = vmatpush.msra.mxu3 %v1520_v24  ;;  %1559 = vmatpush.msra.mxu2 %v1476_v53  ;;  %v1290_v24 = vperm.slane %v1161_v13, 0  ;;  %v1644_v13 = vld [vmem:[#allocation9 + $0x250] sm:$0xff]  ;;  %v1667_v23 = vld [vmem:[#allocation9 + $0x308] sm:$0xff] }
 0x403   : > { %1749 = vmatpush.msra.mxu0 %v1657_v1  ;;  %1773 = vmatpush.msra.mxu1 %v1681_v43  ;;  %v2263_v1 = vld [vmem:[%s3213_s11 + $0x30] sm:$0xff]  ;;  %v1542_v43 = vperm.slane %v2224_v39, 1 }
 0x404   : > { %1574 = vmatpush.msra.mxu3 %v1518_v27  ;;  %1560 = vmatpush.msra.mxu2 %v1474_v58  ;;  %v1686_v27 = vld [vmem:[#allocation9 + $0x3a0] sm:$0xff] }
 0x405   : > { %1774 = vmatpush.msra.mxu1 %v1679_v49 }
 0x406   : > { %1575 = vmatpush.msra.mxu3 %v1516_v31  ;;  %1705 = vmatpush.msrb.mxu2 %v1664_v9  ;;  %v1646_v9 = vld [vmem:[#allocation9 + $0x260] sm:$0xff] }
 0x407   : > { %1775 = vmatpush.msra.mxu1 %v1677_v55  ;;  %v1541_v55 = vperm.slane %v2224_v39, 0 }
 0x408   : > { %1576 = vmatpush.msra.mxu3 %v1514_v35  ;;  %1706 = vmatpush.msrb.mxu2 %v1662_v12  ;;  %v1655_v35 = vld [vmem:[#allocation9 + $0x2a8] sm:$0xff]  ;;  %v1673_v12 = vld [vmem:[#allocation9 + $0x338] sm:$0xff] }
 0x409   : > { %1750 = vmatpush.msra.mxu0 %v1655_v35  ;;  %1776 = vmatpush.msra.mxu1 %v1675_v59  ;;  %v2243_v35 = vld [vmem:[%s3211_s9 + $0x178] sm:$0xff] }
 0x40a   : > { %1577 = vmatpush.msra.mxu3 %v1512_v41  ;;  %1707 = vmatpush.msrb.mxu2 %v1660_v17  ;;  %v1653_v41 = vld [vmem:[#allocation9 + $0x298] sm:$0xff]  ;;  %v1668_v17 = vld [vmem:[#allocation9 + $0x310] sm:$0xff] }
 0x40b   : > { %1751 = vmatpush.msra.mxu0 %v1653_v41  ;;  %1777 = vmatpush.msra.mxu1 %v1673_v12  ;;  %v2240_v41 = vld [vmem:[%s3211_s9 + $0x160] sm:$0xff]  ;;  %v2246_v12 = vld [vmem:[%s3211_s9 + $0x190] sm:$0xff] }
 0x40c   : > { %1578 = vmatpush.msra.mxu3 %v1510_v47  ;;  %1708 = vmatpush.msrb.mxu2 %v1658_v22  ;;  %v1641_v22 = vld [vmem:[#allocation9 + $0x238] sm:$0xff] }
 0x40d   : > { %1752 = vmatpush.msra.mxu0 %v1651_v46  ;;  %v2238_v46 = vld [vmem:[%s3211_s9 + $0x150] sm:$0xff] }
 0x40e   : > { %1579 = vmatpush.msra.mxu3 %v1508_v54  ;;  %1709 = vmatpush.msrb.mxu2 %v1656_v30  ;;  %v1676_v54 = vld [vmem:[#allocation9 + $0x350] sm:$0xff]  ;;  %v2264_v30 = vld [vmem:[%s3213_s11 + $0x38] sm:$0xff] }
 0x40f   : > { %1753 = vmatpush.msra.mxu0 %v1649_v52  ;;  %v1628_v52 = vstv %s3035_s29  ;;  %s2227_s29 = sld [smem:[#allocation2 + $0x82]] }
 0x410   : > { %1580 = vmatpush.msra.mxu3 %v1506_v62  ;;  %1710 = vmatpush.msrb.mxu2 %v1654_v34  ;;  %v1674_v62 = vld [vmem:[#allocation9 + $0x340] sm:$0xff]  ;;  %v2258_v34 = vld [vmem:[%s3211_s9 + $0x1f0] sm:$0xff] }
 0x411   : > { %1581 = vmatmul.f32.vlgmr.msra.gmra.mxu3 %v1472_v63 }
 0x412   : > { %1725 = vmatpush.msrb.mxu3 %v1696_v2  ;;  %1711 = vmatpush.msrb.mxu2 %v1652_v40  ;;  %v2256_v40 = vld [vmem:[%s3211_s9 + $0x1e0] sm:$0xff] }
 0x414   : > { %1726 = vmatpush.msrb.mxu3 %v1694_v4  ;;  %1712 = vmatpush.msrb.mxu2 %v1650_v45  ;;  %v2254_v45 = vld [vmem:[%s3211_s9 + $0x1d0] sm:$0xff] }
 0x416   : > { %1727 = vmatpush.msrb.mxu3 %v1692_v6  ;;  %1713 = vmatpush.msrb.mxu2 %v1648_v50 }
 0x418   : > { %1728 = vmatpush.msrb.mxu3 %v1690_v14  ;;  %1714 = vmatpush.msrb.mxu2 %v1646_v9  ;;  %v1670_v14 = vld [vmem:[#allocation9 + $0x320] sm:$0xff]  ;;  %v2234_v9 = vld [vmem:[%s3211_s9 + $0x130] sm:$0xff] }
 0x41a   : > { %1729 = vmatpush.msrb.mxu3 %v1688_v19  ;;  %1715 = vmatpush.msrb.mxu2 %v1644_v13  ;;  %v1669_v19 = vld [vmem:[#allocation9 + $0x318] sm:$0xff]  ;;  %v2232_v13 = vld [vmem:[%s3211_s9 + $0x120] sm:$0xff] }
 0x41c   : > { %1730 = vmatpush.msrb.mxu3 %v1686_v27  ;;  %1716 = vmatpush.msrb.mxu2 %v1642_v16  ;;  %v1637_v27 = vld [vmem:[#allocation9 + $0x218] sm:$0xff]  ;;  %v2230_v16 = vld [vmem:[%s3211_s9 + $0x110] sm:$0xff] }
 0x41e   : > { %1731 = vmatpush.msrb.mxu3 %v1684_v32  ;;  %1717 = vmatpush.msrb.mxu2 %v1640_v20  ;;  %v2261_v32 = vld [vmem:[%s3213_s11 + $0x20] sm:$0xff] }
 0x420   : > { %1732 = vmatpush.msrb.mxu3 %v1682_v38  ;;  %v2241_v38 = vld [vmem:[%s3211_s9 + $0x168] sm:$0xff] }
 0x422   : > { %1733 = vmatpush.msrb.mxu3 %v1680_v42  ;;  %v2255_v42 = vld [vmem:[%s3211_s9 + $0x1d8] sm:$0xff] }
 0x424   : > { %1734 = vmatpush.msrb.mxu3 %v1678_v48  ;;  %v2253_v48 = vld [vmem:[%s3211_s9 + $0x1c8] sm:$0xff] }
 0x426   : > { %1735 = vmatpush.msrb.mxu3 %v1676_v54 }
 0x428   : > { %1736 = vmatpush.msrb.mxu3 %v1674_v62 }
 0x42a   : > { %1737 = vmatpush.msrb.mxu3 %v1672_v10  ;;  %v2247_v10 = vld [vmem:[%s3211_s9 + $0x198] sm:$0xff] }
 0x42c   : > { %1738 = vmatpush.msrb.mxu3 %v1670_v14  ;;  %v2245_v14 = vld [vmem:[%s3211_s9 + $0x188] sm:$0xff] }
 0x42e   : > { %1739 = vmatpush.msrb.mxu3 %v1668_v17  ;;  %v2229_v17 = vld [vmem:[%s3211_s9 + $0x108] sm:$0xff] }
 0x462   : > { %v1622_v50 = vpop.f32.mrf.mxu1 }
 0x474   : > { %v1287_v21 = vpop.f32.mrf.mxu3 }
 0x475   : > { %v1288_v25 = vadd.f32 %v2371_v11, %v1287_v21  ;;  %v1647_v11 = vld [vmem:[#allocation9 + $0x268] sm:$0xff]  ;;  %v1666_v21 = vld [vmem:[#allocation9 + $0x300] sm:$0xff] }
 0x476   : > { %1754 = vmatpush.msra.mxu0 %v1647_v11  ;;  %1740 = vmatpush.msrb.mxu3 %v1666_v21  ;;  %v2233_v11 = vld [vmem:[%s3211_s9 + $0x128] sm:$0xff] }
 0x477   : > { %v1291_v31 = vmul.f32 %v1290_v24, %v1288_v25  ;;  %v1638_v24 = vld [vmem:[#allocation9 + $0x220] sm:$0xff]  ;;  %v1639_v25 = vld [vmem:[#allocation9 + $0x228] sm:$0xff] }
 0x478   : > { %1755 = vmatpush.msra.mxu0 %v1645_v15  ;;  %1718 = vmatpush.msrb.mxu2 %v1638_v24  ;;  %v2231_v15 = vld [vmem:[%s3211_s9 + $0x118] sm:$0xff]  ;;  %v1788_v24 = vstv %s2227_s29  ;;  %s2034_s29 = sshll.u32 %s2998_s28, 4  ;;  %s2035_s29 = int_to_ptr.vmem [resolvable:$true] %s2034_s29 }
 0x479   : > { %v2221_v36 = vmul.f32 -1.442695, %v1291_v31  ;;  %v2262_v31 = vld [vmem:[%s3213_s11 + $0x28] sm:$0xff]  ;;  %1848 = vmatpush.msra.mxu3 %v2259_v33 }
 0x47a   : > { %1756 = vmatpush.msra.mxu0 %v1643_v18  ;;  %1719 = vmatpush.msrb.mxu2 %v1636_v26  ;;  %v2228_v18 = vld [vmem:[%s3211_s9 + $0x100] sm:$0xff] }
 0x47b   : > { %2378 = vpow2.f32 %v2221_v36  ;;  %v2242_v36 = vld [vmem:[%s3211_s9 + $0x170] sm:$0xff]  ;;  %1849 = vmatpush.msra.mxu3 %v2258_v34 }
 0x47c   : > { %v1422_v44 = vpop.f32.mrf.mxu3  ;;  %1757 = vmatpush.msra.mxu0 %v1641_v22  ;;  %1720 = vmatpush.msrb.mxu2 %v1634_v28  ;;  %v2372_v28 = vld [vmem:[%s3214_s12 + $0x1] ss:$0 sm:$0xff] }
 0x47d   : > { %v1423_v47 = vadd.f32 %v1422_v44, %v1403_v37  ;;  %v2257_v37 = vld [vmem:[%s3211_s9 + $0x1e8] sm:$0xff]  ;;  %v2239_v44 = vld [vmem:[%s3211_s9 + $0x158] sm:$0xff] }
 0x47e   : > { %1758 = vmatpush.msra.mxu0 %v1639_v25  ;;  %1850 = vmatpush.msra.mxu3 %v2257_v37 }
 0x47f   : > { %vm1466_vm10 = vcmp.ge.f32.partialorder %v1423_v47, 0.0  ;;  %v1469_v53 = vmul.f32 %v1468_v51, %v1423_v47 }
 0x480   : > { %1759 = vmatpush.msra.mxu0 %v1637_v27  ;;  %1851 = vmatpush.msra.mxu3 %v2256_v40 }
 0x481   : > { %v2379_v56 = vpop.eup %2378  ;;  %v1471_v57 = vsel %vm1466_vm10, %v1423_v47, %v1469_v53  ;;  %v2252_v53 = vld [vmem:[%s3211_s9 + $0x1c0] sm:$0xff] }
 0x482   : > { %v1295_v58 = vadd.f32 1.0, %v2379_v56  ;;  %1561 = vmatmul.f32.vlgmr.msra.gmra.mxu2 %v1471_v57  ;;  %1601 = vmatmul.f32.vlgmr.msrb.gmra.mxu0 %v1471_v57  ;;  %v2251_v56 = vld [vmem:[%s3211_s9 + $0x1b8] sm:$0xff] }
 0x483   : > { %1760 = vmatpush.msra.mxu0 %v1635_v29  ;;  %1828 = vmatpush.msra.mxu2 %v2243_v35 }
 0x484   : > { %2380 = vrcp.f32 %v1295_v58  ;;  %v1307_v0 = vand.u32 2147483648, %v1295_v58  ;;  %v1305_v3 = vand.u32 2147483647, %v1295_v58  ;;  %vm1301_vm12 = vweird.f32 %v1295_v58  ;;  %1852 = vmatpush.msra.mxu3 %v2255_v42 }
 0x485   : > { %1890 = vmatpush.msrb.mxu0 %v2264_v30  ;;  %1829 = vmatpush.msra.mxu2 %v2242_v36 }
 0x486   : > { %v1308_v5 = vor.u32 1.1754944e-38, %v1307_v0  ;;  %vm1306_vm14 = vcmp.eq.f32.partialorder %v1305_v3, 8.507059e+37  ;;  %1853 = vmatpush.msra.mxu3 %v2254_v45  ;;  %v2237_v3 = vld [vmem:[%s3211_s9 + $0x148] sm:$0xff] }
 0x487   : > { %1891 = vmatpush.msrb.mxu0 %v2263_v1  ;;  %1830 = vmatpush.msra.mxu2 %v2241_v38 }
 0x488   : > { %1854 = vmatpush.msra.mxu3 %v2253_v48 }
 0x489   : > { %1892 = vmatpush.msrb.mxu0 %v2262_v31  ;;  %1831 = vmatpush.msra.mxu2 %v2240_v41 }
 0x48a   : > { %v2381_v51 = vpop.eup %2380  ;;  %1855 = vmatpush.msra.mxu3 %v2252_v53 }
 0x48b   : > { %v1297_v61 = vmul.f32 %v2381_v51, %v1295_v58  ;;  %vm1302_vm11 = vweird.f32 %v2381_v51  ;;  %1893 = vmatpush.msrb.mxu0 %v2261_v32  ;;  %1832 = vmatpush.msra.mxu2 %v2239_v44 }
 0x48c   : > { %vm1303_vm13 = vmor %vm1301_vm12, %vm1302_vm11  ;;  %1856 = vmatpush.msra.mxu3 %v2251_v56 }
 0x48d   : > { %v1298_v63 = vsub.f32 1.0, %v1297_v61  ;;  %1833 = vmatpush.msra.mxu2 %v2238_v46  ;;  %v2271_v46 = vld [vmem:[%s3215_s13 + $0x18] sm:$0xff] }
 0x48f   : > { %v1299_v2 = vmul.f32 %v2381_v51, %v1298_v63  ;;  %1834 = vmatpush.msra.mxu2 %v2237_v3 }
 0x491   : > { %v1300_v4 = vadd.f32 %v2381_v51, %v1299_v2  ;;  %v3066_v2 = vld [vmem:[%s2889_s18] sm:$0xff] }
 0x493   : > { %v1304_v6 = vsel %vm1303_vm13, %v2381_v51, %v1300_v4  ;;  %v2250_v4 = vld [vmem:[%s3211_s9 + $0x1b0] sm:$0xff] }
 0x494   : > { %v1309_v7 = vsel %vm1306_vm14, %v1308_v5, %v1304_v6  ;;  %v1582_v51 = vpop.f32.mrf.mxu3  ;;  %v2236_v5 = vld [vmem:[%s3211_s9 + $0x140] sm:$0xff]  ;;  %1857 = vmatpush.msra.mxu3 %v2250_v4  ;;  %v2249_v6 = vld [vmem:[%s3211_s9 + $0x1a8] sm:$0xff] }
 0x495   : > { %v1311_v8 = vmul.f32 %v1309_v7, %v2892_v60  ;;  %v1671_v60 = vld [vmem:[#allocation9 + $0x328] sm:$0xff]  ;;  %v2235_v7 = vld [vmem:[%s3211_s9 + $0x138] sm:$0xff]  ;;  %1835 = vmatpush.msra.mxu2 %v2236_v5 }
 0x496   : > { %1778 = vmatpush.msra.mxu1 %v1671_v60  ;;  %1858 = vmatpush.msra.mxu3 %v2249_v6  ;;  %v2244_v60 = vld [vmem:[%s3211_s9 + $0x180] sm:$0xff] }
 0x497   : > { %1312 = vst.msk [vmem:[%s2998_s28] sm:$0xff] %vm1171_vm4, %v1311_v8  ;;  %v2248_v8 = vld [vmem:[%s3211_s9 + $0x1a0] sm:$0xff]  ;;  %1836 = vmatpush.msra.mxu2 %v2235_v7 }
 0x498   : > { %1779 = vmatpush.msra.mxu1 %v1669_v19  ;;  %1859 = vmatpush.msra.mxu3 %v2248_v8  ;;  %v2226_v19 = vld [vmem:[%s3210_s8 + $0x2] sm:$0x3] }
 0x499   : > { %1837 = vmatpush.msra.mxu2 %v2234_v9  ;;  %v1702_v20 = vperm.slane %v2226_v19, 1  ;;  %v1701_v26 = vperm.slane %v2226_v19, 0 }
 0x49a   : > { %1780 = vmatpush.msra.mxu1 %v1667_v23  ;;  %1860 = vmatpush.msra.mxu3 %v2247_v10 }
 0x49b   : > { %1838 = vmatpush.msra.mxu2 %v2233_v11 }
 0x49c   : > { %1861 = vmatpush.msra.mxu3 %v2246_v12 }
 0x49d   : > { %1839 = vmatpush.msra.mxu2 %v2232_v13 }
 0x49e   : > { %1862 = vmatpush.msra.mxu3 %v2245_v14 }
 0x49f   : > { %1840 = vmatpush.msra.mxu2 %v2231_v15 }
 0x4a0   : > { %1863 = vmatpush.msra.mxu3 %v2244_v60 }
 0x4a1   : > { %1841 = vmatpush.msra.mxu2 %v2230_v16 }
 0x4a3   : > { %1842 = vmatpush.msra.mxu2 %v2229_v17 }
 0x4a5   : > { %1843 = vmatpush.msra.mxu2 %v2228_v18 }
 0x4ff   : > { %v1602_v47 = vpop.f32.mrf.mxu0 }
 0x500   : > { %v1603_v49 = vadd.f32 %v1602_v47, %v1542_v43  ;;  %v2270_v47 = vld [vmem:[%s3215_s13 + $0x10] sm:$0xff] }
 0x502   : > { %v1623_v54 = vadd.f32 %v1622_v50, %v1603_v49 }
 0x504   : > { %vm1627_vm15 = vcmp.ge.f32.partialorder %v1623_v54, 0.0  ;;  %v1630_v57 = vmul.f32 %v1628_v52, %v1623_v54 }
 0x505   : > { %v1562_v58 = vpop.f32.mrf.mxu2 }
 0x506   : > { %v1563_v62 = vadd.f32 %v1562_v58, %v1541_v55  ;;  %v1632_v59 = vsel %vm1627_vm15, %v1623_v54, %v1630_v57 }
 0x507   : > { %1741 = vmatmul.f32.vlgmr.msrb.gmra.mxu3 %v1632_v59  ;;  %1781 = vmatmul.f32.vlgmr.msra.gmra.mxu1 %v1632_v59 }
 0x508   : > { %v1583_v61 = vadd.f32 %v1582_v51, %v1563_v62 }
 0x50a   : > { %vm1626_vm0 = vcmp.ge.f32.partialorder %v1583_v61, 0.0  ;;  %v1629_v63 = vmul.f32 %v1628_v52, %v1583_v61 }
 0x50c   : > { %v1631_v0 = vsel %vm1626_vm0, %v1583_v61, %v1629_v63 }
 0x50d   : > { %1721 = vmatmul.f32.vlgmr.msrb.gmra.mxu2 %v1631_v0  ;;  %1761 = vmatmul.f32.vlgmr.msra.gmra.mxu0 %v1631_v0 }
 0x515   : > { %2266 = vmatmul.msk.f32.vlgmr.msrb.gmra.mxu0 %vm1171_vm4, %v3066_v2 }
 0x584   : > { %v1782_v23 = vpop.f32.mrf.mxu1 }
 0x58a   : > { %v1762_v21 = vpop.f32.mrf.mxu0  ;;  %v1742_v31 = vpop.f32.mrf.mxu3 }
 0x58b   : > { %v1763_v22 = vadd.f32 %v1762_v21, %v1702_v20 }
 0x58d   : > { %v1783_v25 = vadd.f32 %v1782_v23, %v1763_v22 }
 0x58f   : > { %v1790_v27 = vmul.f32 %v1788_v24, %v1783_v25  ;;  %vm1787_vm1 = vcmp.ge.f32.partialorder %v1783_v25, 0.0 }
 0x590   : > { %v1722_v29 = vpop.f32.mrf.mxu2 }
 0x591   : > { %v1723_v30 = vadd.f32 %v1722_v29, %v1701_v26  ;;  %v1792_v1 = vsel %vm1787_vm1, %v1783_v25, %v1790_v27 }
 0x592   : > { %1864 = vmatmul.f32.vlgmr.msra.gmra.mxu3 %v1792_v1  ;;  %v1895_v32 = vpop.f32.mrf.mxu0 }
 0x593   : > { %v1743_v33 = vadd.f32 %v1742_v31, %v1723_v30  ;;  %v1896_v34 = vadd.f32 %v2372_v28, %v1895_v32 }
 0x595   : > { %v1789_v35 = vmul.f32 %v1788_v24, %v1743_v33  ;;  %1899 = vrot.lane.b32.xlu2 %v1896_v34, %s2611_s30  ;;  %vm1786_vm2 = vcmp.ge.f32.partialorder %v1743_v33, 0.0  ;;  %s2510_s30 = sshra.s32 %s2037_s0, 4  ;;  %s2511_s30 = int_to_ptr.hbm [resolvable:$true] %s2510_s30 }
 0x596   : > { %s2512_s17 = scalar_lea.hbm %s2511_s30, 8  ;;  %p2517_p3 = scmp.lt.s32.totalorder %s2511_s30, %s3256_s27 }
 0x597   : > { %v1791_v36 = vsel %vm1786_vm2, %v1743_v33, %v1789_v35  ;;  %p2513_p0 = scmp.ne.s32.totalorder %s2511_s30, %s2512_s17  ;;  %p2518_p4 = scmp.lt.s32.totalorder %s2516_s19, %s2512_s17 }
 0x598   : > { %1844 = vmatmul.f32.vlgmr.msra.gmra.mxu2 %v1791_v36 }
 0x599   : > { %p2514_p1 = pnand %p2513_p0, %p2735_p5  ;;  %p2519_p7 = por %p2518_p4, %p2517_p3 }
 0x59b   : > { %p2515_p2 = pneg %p2514_p1 }
 0x59d   : > { %p2520_p8 = pnand %p2519_p7, %p2515_p2 }
 0x5ef   : > { %v1900_v37 = vpop.permute.xlu2 %1899 }
 0x5f0   : > { %2267 = vmatpush.xpose.msk.msrb.mxu1 %vm1198_vm7, %v1900_v37 }
 0x5f3   : > { %2268 = vmatmul.msk.f32.vlgmr.msrb.gmra.mxu1 %vm1198_vm7, %v1896_v34 }
 0x5f4   : > { %1987 = vmatpush.msra.mxu1 %v2271_v46 }
 0x5f6   : > { %1988 = vmatpush.msra.mxu1 %v2270_v47 }
 0x670   : > { %v1922_v38 = vpop.f32.mrf.mxu1 }
 0x671   : > { %v1925_v39 = vsel %vm1223_vm8, %v1922_v38, -inf }
 0x672   : > { %1926 = vmax.xlane.f32.xlu2 %v1925_v39 }
 0x68a   : > { %1931 = vrot.lane.b32.xlu2 %v1896_v34, %s2610_s20 }
 0x6e5   : > { %v1927_v40 = vpop.xlane.xlu2 %1926 }
 0x6e6   : > { %v1928_v41 = vsub.f32 %v1922_v38, %v1927_v40 }
 0x6e8   : > { %v1929_v42 = vmul.f32 1.442695, %v1928_v41 }
 0x6ea   : > { %2382 = vpow2.f32 %v1929_v42 }
 0x6ed   : > { %v1932_v43 = vpop.permute.xlu2 %1931 }
 0x6ee   : > { %1952 = vmatpush.msra.mxu0 %v1932_v43 }
 0x6f0   : > { %v2383_v44 = vpop.eup %2382 }
 0x6f1   : > { %2269 = vmatmul.msk.f32.vlgmr.msra.gmra.mxu0 %vm1223_vm8, %v2383_v44  ;;  %v1957_v45 = vsel %vm1223_vm8, %v2383_v44, 0.0 }
 0x6f2   : > { %1958 = vadd.xlane.f32.xlu0 %v1957_v45 }
 0x765   : > { %v1959_v48 = vpop.xlane.xlu0 %1958 }
 0x766   : > { %2384 = vrcp.f32 %v1959_v48 }
 0x76c   : > { %v2385_v49 = vpop.eup %2384 }
 0x76e   : > { %v1954_v50 = vpop.f32.mrf.mxu0 }
 0x76f   : > { %v1961_v52 = vmul.f32 %v2385_v49, %v1954_v50 }
 0x771   : > { %2273 = vmatmul.msk.f32.vlgmr.msra.gmra.mxu1 %vm1198_vm7, %v1961_v52 }
 0x772   : > { %2523 = shalt.err (!%p2520_p8)
}
 0x773   : > { %2297 = dma.vmem_to_hbm [thread:$0]  (%p2735_p5), %s2035_s29, 128, %s2037_s0, %s2017_s5   ;;  %v2260_v53 = vld [vmem:[%s3212_s10 + $0x1] sm:$0x1]  ;;  %v1845_v54 = vpop.f32.mrf.mxu2  ;;  %v1865_v56 = vpop.f32.mrf.mxu3 }
 0x774   : > { %v1846_v55 = vadd.f32 %v2260_v53, %v1845_v54  ;;  %v2373_v58 = vld [vmem:[%s3216_s14 + $0x1] ss:$0 sm:$0xff]  ;;  %s3257_s19 = sld [smem:[#allocation31_spill]]  ;;  %s3258_s29 = sshll.u32 %s2992_s26, 3 }
 0x775   : > { %s600_s0 = scalar_lea.vmem [#allocation11], %s3258_s29  ;;  %s2022_s25 = scalar_lea.sflag [#allocation12], %s2992_s26 }
 0x776   : > { %v1866_v57 = vadd.f32 %v1865_v56, %v1846_v55  ;;  %s2048_s5 = sshll.u32 %s600_s0, 4  ;;  %s2049_s5 = int_to_ptr.vmem [resolvable:$true] %s2048_s5 }
 0x778   : > { %v1993_v59 = vperm.slane %v1866_v57, 0 }
 0x77a   : > { %s2046_s24 = scalar_lea.hbm %s3257_s19, %s2277_s16  ;;  %s2544_s28 = scalar_lea.hbm %s3257_s19, 16 }
 0x77b   : > { %s2050_s30 = sshll.u32 %s2046_s24, 4  ;;  %s2051_s30 = int_to_ptr.hbm [resolvable:$true] %s2050_s30 }
 0x77c   : > { %s2538_s16 = sshra.s32 %s2051_s30, 4  ;;  %s2539_s16 = int_to_ptr.hbm [resolvable:$true] %s2538_s16 }
 0x77d   : > { %s2540_s17 = scalar_lea.hbm %s2539_s16, 8  ;;  %p2545_p12 = scmp.lt.s32.totalorder %s2539_s16, %s3257_s19 }
 0x77e   : > { %p2541_p9 = scmp.ne.s32.totalorder %s2539_s16, %s2540_s17  ;;  %p2546_p13 = scmp.lt.s32.totalorder %s2544_s28, %s2540_s17 }
 0x780   : > { %p2542_p10 = pnand %p2541_p9, %p2735_p5  ;;  %p2547_p0 = por %p2546_p13, %p2545_p12 }
 0x782   : > { %p2543_p11 = pneg %p2542_p10 }
 0x784   : > { %p2548_p1 = pnand %p2547_p0, %p2543_p11 }
 0x7ee   : > { %v1990_v62 = vpop.f32.mrf.mxu1 }
 0x7ef   : > { %v1991_v51 = vadd.f32 %v2373_v58, %v1990_v62 }
 0x7f1   : > { %v1994_v61 = vmul.f32 %v1993_v59, %v1991_v51 }
 0x7f3   : > { %v2274_v63 = vmul.f32 -1.442695, %v1994_v61 }
 0x7f5   : > { %2386 = vpow2.f32 %v2274_v63 }
 0x7fb   : > { %v2387_v0 = vpop.eup %2386 }
 0x7fc   : > { %v1998_v3 = vadd.f32 1.0, %v2387_v0 }
 0x7fe   : > { %2388 = vrcp.f32 %v1998_v3  ;;  %v2010_v7 = vand.u32 2147483648, %v1998_v3  ;;  %v2008_v9 = vand.u32 2147483647, %v1998_v3  ;;  %vm2004_vm5 = vweird.f32 %v1998_v3 }
 0x800   : > { %v2011_v11 = vor.u32 1.1754944e-38, %v2010_v7  ;;  %vm2009_vm7 = vcmp.eq.f32.partialorder %v2008_v9, 8.507059e+37 }
 0x804   : > { %v2389_v4 = vpop.eup %2388 }
 0x805   : > { %v2000_v5 = vmul.f32 %v2389_v4, %v1998_v3  ;;  %vm2005_vm3 = vweird.f32 %v2389_v4 }
 0x806   : > { %vm2006_vm6 = vmor %vm2004_vm5, %vm2005_vm3 }
 0x807   : > { %v2001_v6 = vsub.f32 1.0, %v2000_v5 }
 0x809   : > { %v2002_v8 = vmul.f32 %v2389_v4, %v2001_v6 }
 0x80b   : > { %v2003_v10 = vadd.f32 %v2389_v4, %v2002_v8 }
 0x80d   : > { %v2007_v12 = vsel %vm2006_vm6, %v2389_v4, %v2003_v10 }
 0x80e   : > { %v2012_v13 = vsel %vm2009_vm7, %v2011_v11, %v2007_v12 }
 0x80f   : > { %v2014_v14 = vmul.f32 %v3066_v2, %v2012_v13 }
 0x811   : > { %2015 = vst.msk [vmem:[%s600_s0] sm:$0xff] %vm1171_vm4, %v2014_v14 }
 0x812   : > { %2551 = shalt.err (!%p2548_p1)
}
 0x813   : > { %2298 = dma.vmem_to_hbm [thread:$0]  (%p2735_p5), %s2049_s5, 128, %s2051_s30, %s2022_s25  }
 0x814 PF: > { %s3259_s26 = sld [smem:[#allocation21_spill]] }
 0x815   : > { %s3260_s23 = sld [smem:[#allocation18_spill]] }
 0x81a   : > { %p2329_p2 = scmp.ge.s32.totalorder %s3259_s26, 2 }
 0x81b   : > { %s2062_s2 = sand.u32 1, %s3260_s23  }
 0x81c   : > { %p2315_p3 = pnand %p2329_p2, %p2739_p6  ;;  %s2063_s24 = scalar_lea.sflag [#allocation4], %s2062_s2 }
 0x81e   : > { %p2316_p4 = pneg %p2315_p3 }
 0x820   : > { %2581 = dma.done.wait (%p2316_p4), %s2063_s24, 128  }
 0x821   : > { %2583 = vsyncadd (%p2316_p4), %s2063_s24, 4294967168  ;;  %s2073_s29 = scalar_lea.sflag [#allocation12], %s2062_s2 }
 0x822   : > { %2585 = dma.done.wait (%p2316_p4), %s2073_s29, 128  }
 0x823   : > { %2587 = vsyncadd (%p2316_p4), %s2073_s29, 4294967168  ;;  %s3262_s24 = sld [smem:[#allocation22_spill]] }
 0x824   : > { %s3263_s21 = sld [smem:[#allocation19_spill]] }
 0x825   : > { %s3264_s22 = sld [smem:[#allocation20_spill]] }
 0x826   : > { %s3265_s23 = sld [smem:[#allocation23_spill]] }
 0x829   : > { %p33_p5 = scmp.ge.s32.totalorder %s3262_s24, 4  }
 0x82b   :  { %35 = sbr.rel (!%p33_p5) target bundleno = 15 (0xf), region = 165 }
 0x830   :  { %2079 = vsyncpa [#allocation3], 1 }
 0x831   :  { %2081 = vsyncpa [#allocation3 + $0x1], 1 }
 0x832   :  { %2082 = vsyncpa [#allocation8], 1 }
 0x833   :  { %2083 = vsyncpa [#allocation4], 1 }
 0x834   :  { %2085 = vsyncpa [#allocation4 + $0x1], 1 }
 0x835   :  { %2086 = vsyncpa [#allocation12], 1 }
 0x836   :  { %2088 = vsyncpa [#allocation12 + $0x1], 1 }
 0x837   :  { %2089 = vsyncpa [#allocation5], 1 }
 0x838   :  { %2091 = vsyncpa [#allocation5 + $0x1], 1 }

</bundles_post_ra>
